<compile_context>
chip_gen: v7x
topology: tpu7x:2x2x1
jax: 0.10.0
libtpu: 0.0.40
codegen_flags: <defaults>
</compile_context>

<pallas_src>
import functools
import math

import numpy as np

import jax
import jax.numpy as jnp
from jax.experimental import pallas as pl
from jax.experimental.pallas import tpu as pltpu

MATMUL_DTYPE = jnp.bfloat16          # MXU operand dtype; accumulation stays f32
LN_EPS = 1e-5
VMEM_LIMIT_BYTES = 32 * 1024 * 1024  # explicit; re-derive for production L / v7x


def _pad128(n):
    return ((n + 127) // 128) * 128


# ----------------------------------------------------------------------------
# In-kernel helpers (traced inside Pallas kernels)
# ----------------------------------------------------------------------------
def _layernorm_padded(x, g, b, d_real, eps=LN_EPS):
    """LayerNorm over lane-padded features.

    Padded lanes of x are exactly zero by construction, so statistics over the
    real feature count can use the E[x^2]-mu^2 form without masking.  gamma is
    zero in padded lanes, which keeps the output's padded lanes at zero.
    """
    inv_d = 1.0 / d_real
    mu = jnp.sum(x, axis=-1, keepdims=True) * inv_d
    var = jnp.sum(x * x, axis=-1, keepdims=True) * inv_d - mu * mu
    return (x - mu) * jax.lax.rsqrt(var + eps) * g + b


def _conv1d_same_flat(h, w_taps, b, ksz, seq_len):
    """'same' 1-D conv over the time axis of flattened [B*seq_len, C] tokens.

    h: [M, C] f32; w_taps: [ksz, C, Cout] (MATMUL_DTYPE); b: [1, Cout] f32.
    Implemented as ksz tap matmuls accumulated in f32 on pltpu.roll-shifted
    rows (XLU slot) -- no [L, ksz*C] im2col buffer and no lane-axis concat.
    Sequence edges AND batch boundaries are zero-masked by the same mask.
    """
    M, _ = h.shape
    cout = w_taps.shape[-1]
    pad_l = (ksz - 1) // 2
    pos = jax.lax.broadcasted_iota(jnp.int32, (M, 1), 0) % seq_len
    acc = jnp.zeros((M, cout), jnp.float32) + b
    for t in range(ksz):
        off = t - pad_l
        if off == 0:
            tap_in = h
        else:
            shifted = pltpu.roll(h, shift=(-off) % M, axis=0)
            src = pos + off
            valid = jnp.logical_and(src >= 0, src < seq_len).astype(h.dtype)
            tap_in = shifted * valid
        acc = acc + jnp.dot(tap_in.astype(MATMUL_DTYPE), w_taps[t],
                            preferred_element_type=jnp.float32)
    return acc


def _fft_block_body(x, wqkv, bqkv, wo, bo, g1, b1, w1, c1b, w2, c2b, g2, b2,
                    *, batch, seq, n_heads, dh_pad, ksz, d_real):
    """One FFT block on flattened tokens x: [M, Dp]  (M = batch * seq)."""
    M, Dp = x.shape

    # Fused QKV projection; 1/sqrt(d_head) is folded into the Q weights.
    qkv = jnp.dot(x.astype(MATMUL_DTYPE), wqkv,
                  preferred_element_type=jnp.float32) + bqkv      # [M, 3*H*Dhp]

    attn = jnp.zeros((M, Dp), jnp.float32)
    for h in range(n_heads):  # static; all lane slices are 128-aligned
        q = qkv[:, h * dh_pad:(h + 1) * dh_pad].reshape(batch, seq, dh_pad)
        k = qkv[:, (n_heads + h) * dh_pad:(n_heads + h + 1) * dh_pad
                ].reshape(batch, seq, dh_pad)
        v = qkv[:, (2 * n_heads + h) * dh_pad:(2 * n_heads + h + 1) * dh_pad
                ].reshape(batch, seq, dh_pad)
        s = jnp.einsum("bqd,bkd->bqk", q.astype(MATMUL_DTYPE),
                       k.astype(MATMUL_DTYPE),
                       preferred_element_type=jnp.float32)
        m = jnp.max(s, axis=-1, keepdims=True)
        p = jnp.exp(s - m)
        p = p * pl.reciprocal(jnp.sum(p, axis=-1, keepdims=True), approx=True)
        ah = jnp.einsum("bqk,bkd->bqd", p.astype(MATMUL_DTYPE),
                        v.astype(MATMUL_DTYPE),
                        preferred_element_type=jnp.float32)
        # Accumulate each head's output through its slice of Wo (no lane concat).
        attn = attn + jnp.dot(ah.reshape(M, dh_pad).astype(MATMUL_DTYPE),
                              wo[h * dh_pad:(h + 1) * dh_pad, :],
                              preferred_element_type=jnp.float32)
    attn = attn + bo

    h1 = _layernorm_padded(x + attn, g1, b1, d_real)

    # Conv FFN (tap matmuls, ReLU fused); intermediate stays in VMEM.
    ff = jnp.maximum(_conv1d_same_flat(h1, w1, c1b, ksz, seq), 0.0)
    ff = _conv1d_same_flat(ff, w2, c2b, ksz, seq)

    return _layernorm_padded(h1 + ff, g2, b2, d_real)


# ----------------------------------------------------------------------------
# Pallas kernels
# ----------------------------------------------------------------------------
def _encoder_stack_kernel(onehot_ref, emb_ref, pe_ref, wqkv_ref, bqkv_ref,
                          wo_ref, bo_ref, g1_ref, b1_ref, w1_ref, c1b_ref,
                          w2_ref, c2b_ref, g2_ref, b2_ref, o_ref,
                          *, n_heads, dh_pad, ksz, d_real):
    blk = pl.program_id(0)
    B, L, Dp = o_ref.shape
    M = B * L

    @pl.when(blk == 0)
    def _():  # fused embedding (one-hot matmul) + positional encoding
        oh = onehot_ref[...].reshape(M, onehot_ref.shape[-1])
        x0 = jnp.dot(oh.astype(MATMUL_DTYPE), emb_ref[...],
                     preferred_element_type=jnp.float32)
        o_ref[...] = x0.reshape(B, L, Dp) + pe_ref[...][None]

    x = o_ref[...].reshape(M, Dp)  # carry lives in the (resident) output block
    y = _fft_block_body(
        x, wqkv_ref[0], bqkv_ref[0], wo_ref[0], bo_ref[0], g1_ref[0], b1_ref[0],
        w1_ref[0], c1b_ref[0], w2_ref[0], c2b_ref[0], g2_ref[0], b2_ref[0],
        batch=B, seq=L, n_heads=n_heads, dh_pad=dh_pad, ksz=ksz, d_real=d_real)
    o_ref[...] = y.reshape(B, L, Dp)


def _decoder_stack_kernel(feat_ref, pe_ref, wp_ref, bp_ref, wqkv_ref, bqkv_ref,
                          wo_ref, bo_ref, g1_ref, b1_ref, w1_ref, c1b_ref,
                          w2_ref, c2b_ref, g2_ref, b2_ref, wmel_ref, bmel_ref,
                          mel_ref, act_ref, *, n_heads, dh_pad, ksz, d_real):
    blk = pl.program_id(0)
    B, Lm, Dp = act_ref.shape
    M = B * Lm

    @pl.when(blk == 0)
    def _():  # fused 1x1 projection conv + positional encoding
        f = feat_ref[...].reshape(M, feat_ref.shape[-1])
        x0 = jnp.dot(f.astype(MATMUL_DTYPE), wp_ref[...],
                     preferred_element_type=jnp.float32) + bp_ref[...]
        act_ref[...] = x0.reshape(B, Lm, Dp) + pe_ref[...][None]

    x = act_ref[...].reshape(M, Dp)
    y = _fft_block_body(
        x, wqkv_ref[0], bqkv_ref[0], wo_ref[0], bo_ref[0], g1_ref[0], b1_ref[0],
        w1_ref[0], c1b_ref[0], w2_ref[0], c2b_ref[0], g2_ref[0], b2_ref[0],
        batch=B, seq=Lm, n_heads=n_heads, dh_pad=dh_pad, ksz=ksz, d_real=d_real)
    act_ref[...] = y.reshape(B, Lm, Dp)

    @pl.when(blk == pl.num_programs(0) - 1)
    def _():  # fused mel linear on the final block's output
        mel = jnp.dot(y.astype(MATMUL_DTYPE), wmel_ref[...],
                      preferred_element_type=jnp.float32) + bmel_ref[...]
        mel_ref[...] = mel.reshape(B, Lm, mel_ref.shape[-1])


def _var_pred_kernel(x_ref, w1_ref, b1_ref, g1_ref, bg1_ref, w2_ref, b2_ref,
                     g2_ref, bg2_ref, wl_ref, bl_ref, o_ref, *, ksz, d_filter):
    # Conv -> ReLU -> LN -> Conv -> ReLU -> LN -> Linear(filter, 1); dropout=id.
    B, L = o_ref.shape
    Dp = x_ref.shape[-1]
    x = x_ref[...].reshape(B * L, Dp)
    h = jnp.maximum(_conv1d_same_flat(x, w1_ref[...], b1_ref[...], ksz, L), 0.0)
    h = _layernorm_padded(h, g1_ref[...], bg1_ref[...], d_filter)
    h = jnp.maximum(_conv1d_same_flat(h, w2_ref[...], b2_ref[...], ksz, L), 0.0)
    h = _layernorm_padded(h, g2_ref[...], bg2_ref[...], d_filter)
    # 1-unit linear as a lane reduction; written lane-dense as [B, L]
    # (no last-dim-1 masked partial stores).
    fp = h.shape[-1]
    out = jnp.sum(h.reshape(B, L, fp) * wl_ref[...], axis=-1) + bl_ref[...]
    o_ref[...] = out


def _postnet_kernel(mel_ref, w_ref, b_ref, o_ref, *, ksz, n_layers):
    # TODO(synk): dropout / BatchNorm inside Postnet are identity at eval time.
    B, L, Cp = o_ref.shape
    mel = mel_ref[...].reshape(B * L, Cp)
    h = mel
    for li in range(n_layers):
        h = _conv1d_same_flat(h, w_ref[li], b_ref[li], ksz, L)
        if li < n_layers - 1:
            h = jnp.tanh(h)
    o_ref[...] = (mel + h).reshape(B, L, Cp)


# ----------------------------------------------------------------------------
# Pallas wrappers
# ----------------------------------------------------------------------------
def _const_spec(shape):
    n = len(shape)
    return pl.BlockSpec(tuple(shape), lambda i: (0,) * n)


def _blk_spec(trailing_shape):
    n = len(trailing_shape)
    return pl.BlockSpec((1,) + tuple(trailing_shape), lambda i: (i,) + (0,) * n)


def run_encoder_stack(onehot, emb_table, pe, blocks, *, n_heads, ksz, d_real,
                      dh_pad):
    B, L, V = onehot.shape
    Dp = emb_table.shape[-1]
    n_blocks = blocks["wqkv"].shape[0]
    hidp = blocks["c1b"].shape[-1]
    qkv_n = 3 * n_heads * dh_pad
    kernel = functools.partial(_encoder_stack_kernel, n_heads=n_heads,
                               dh_pad=dh_pad, ksz=ksz, d_real=d_real)
    return pl.pallas_call(
        kernel,
        out_shape=jax.ShapeDtypeStruct((B, L, Dp), jnp.float32),
        grid=(n_blocks,),
        in_specs=[
            _const_spec((B, L, V)),
            _const_spec((V, Dp)),
            _const_spec((L, Dp)),
            _blk_spec((Dp, qkv_n)),
            _blk_spec((1, qkv_n)),
            _blk_spec((n_heads * dh_pad, Dp)),
            _blk_spec((1, Dp)),
            _blk_spec((1, Dp)),
            _blk_spec((1, Dp)),
            _blk_spec((ksz, Dp, hidp)),
            _blk_spec((1, hidp)),
            _blk_spec((ksz, hidp, Dp)),
            _blk_spec((1, Dp)),
            _blk_spec((1, Dp)),
            _blk_spec((1, Dp)),
        ],
        out_specs=_const_spec((B, L, Dp)),
        compiler_params=pltpu.CompilerParams(
            dimension_semantics=("arbitrary",),
            vmem_limit_bytes=VMEM_LIMIT_BYTES),
    )(onehot, emb_table, pe, blocks["wqkv"], blocks["bqkv"], blocks["wo"],
      blocks["bo"], blocks["g1"], blocks["b1"], blocks["w1"], blocks["c1b"],
      blocks["w2"], blocks["c2b"], blocks["g2"], blocks["b2"])


def run_decoder_stack(feats, pe, proj, blocks, mel_lin, *, n_heads, ksz,
                      d_real, dh_pad):
    B, Lm, Dvp = feats.shape
    Dp = proj["w"].shape[-1]
    MelP = mel_lin["w"].shape[-1]
    n_blocks = blocks["wqkv"].shape[0]
    hidp = blocks["c1b"].shape[-1]
    qkv_n = 3 * n_heads * dh_pad
    kernel = functools.partial(_decoder_stack_kernel, n_heads=n_heads,
                               dh_pad=dh_pad, ksz=ksz, d_real=d_real)
    return pl.pallas_call(
        kernel,
        out_shape=jax.ShapeDtypeStruct((B, Lm, MelP), jnp.float32),
        grid=(n_blocks,),
        in_specs=[
            _const_spec((B, Lm, Dvp)),
            _const_spec((Lm, Dp)),
            _const_spec((Dvp, Dp)),
            _const_spec((1, Dp)),
            _blk_spec((Dp, qkv_n)),
            _blk_spec((1, qkv_n)),
            _blk_spec((n_heads * dh_pad, Dp)),
            _blk_spec((1, Dp)),
            _blk_spec((1, Dp)),
            _blk_spec((1, Dp)),
            _blk_spec((ksz, Dp, hidp)),
            _blk_spec((1, hidp)),
            _blk_spec((ksz, hidp, Dp)),
            _blk_spec((1, Dp)),
            _blk_spec((1, Dp)),
            _blk_spec((1, Dp)),
            _const_spec((Dp, MelP)),
            _const_spec((1, MelP)),
        ],
        out_specs=_const_spec((B, Lm, MelP)),
        scratch_shapes=[pltpu.VMEM((B, Lm, Dp), jnp.float32)],
        compiler_params=pltpu.CompilerParams(
            dimension_semantics=("arbitrary",),
            vmem_limit_bytes=VMEM_LIMIT_BYTES),
    )(feats, pe, proj["w"], proj["b"], blocks["wqkv"], blocks["bqkv"],
      blocks["wo"], blocks["bo"], blocks["g1"], blocks["b1"], blocks["w1"],
      blocks["c1b"], blocks["w2"], blocks["c2b"], blocks["g2"], blocks["b2"],
      mel_lin["w"], mel_lin["b"])


def variance_predictor(x, p, *, ksz, d_filter):
    B, L, Dp = x.shape
    Fp = p["b1"].shape[-1]
    kernel = functools.partial(_var_pred_kernel, ksz=ksz, d_filter=d_filter)
    return pl.pallas_call(
        kernel,
        out_shape=jax.ShapeDtypeStruct((B, L), jnp.float32),
        grid=(1,),
        in_specs=[
            _const_spec((B, L, Dp)),
            _const_spec((ksz, Dp, Fp)),
            _const_spec((1, Fp)),
            _const_spec((1, Fp)),
            _const_spec((1, Fp)),
            _const_spec((ksz, Fp, Fp)),
            _const_spec((1, Fp)),
            _const_spec((1, Fp)),
            _const_spec((1, Fp)),
            _const_spec((1, 1, Fp)),
            _const_spec((1, 1)),
        ],
        out_specs=_const_spec((B, L)),
        compiler_params=pltpu.CompilerParams(
            dimension_semantics=("arbitrary",),
            vmem_limit_bytes=VMEM_LIMIT_BYTES),
    )(x, p["w1"], p["b1"], p["g1"], p["bg1"], p["w2"], p["b2"], p["g2"],
      p["bg2"], p["wl"], p["bl"])


def postnet_apply(mel_p, pn, ksz=5):
    B, L, Cp = mel_p.shape
    n_layers = pn["w"].shape[0]
    kernel = functools.partial(_postnet_kernel, ksz=ksz, n_layers=n_layers)
    return pl.pallas_call(
        kernel,
        out_shape=jax.ShapeDtypeStruct((B, L, Cp), jnp.float32),
        grid=(1,),
        in_specs=[
            _const_spec((B, L, Cp)),
            _const_spec((n_layers, ksz, Cp, Cp)),
            _const_spec((n_layers, 1, Cp)),
        ],
        out_specs=_const_spec((B, L, Cp)),
        compiler_params=pltpu.CompilerParams(
            dimension_semantics=("arbitrary",),
            vmem_limit_bytes=VMEM_LIMIT_BYTES),
    )(mel_p, pn["w"], pn["b"])


# ----------------------------------------------------------------------------
# Parameter init (real-sized random weights embedded in zero-padded buffers)
# ----------------------------------------------------------------------------
class KeyGen:
    def __init__(self, seed=0):
        self.key = jax.random.PRNGKey(seed)

    def __call__(self):
        self.key, k = jax.random.split(self.key)
        return k


def _randn(kg, shape, scale=0.1):
    return scale * np.asarray(jax.random.normal(kg(), shape, jnp.float32))


def _init_fft_stack(kg, n_blocks, d, hid, n_heads, ksz, scale=0.1):
    dp, hidp = _pad128(d), _pad128(hid)
    dh = d // n_heads
    dhp = _pad128(dh)
    qk_scale = 1.0 / math.sqrt(dh)      # folded into the Q weights
    qn = 3 * n_heads * dhp
    wqkv = np.zeros((n_blocks, dp, qn), np.float32)
    wo = np.zeros((n_blocks, n_heads * dhp, dp), np.float32)
    w1 = np.zeros((n_blocks, ksz, dp, hidp), np.float32)
    w2 = np.zeros((n_blocks, ksz, hidp, dp), np.float32)
    g = np.zeros((n_blocks, 1, dp), np.float32)
    g[:, :, :d] = 1.0                   # gamma zero in padded lanes
    for blk in range(n_blocks):
        wq = _randn(kg, (d, d), scale)
        wk = _randn(kg, (d, d), scale)
        wv = _randn(kg, (d, d), scale)
        wor = _randn(kg, (d, d), scale)
        for h in range(n_heads):
            wqkv[blk, :d, h * dhp:h * dhp + dh] = \
                wq[:, h * dh:(h + 1) * dh] * qk_scale
            wqkv[blk, :d, (n_heads + h) * dhp:(n_heads + h) * dhp + dh] = \
                wk[:, h * dh:(h + 1) * dh]
            wqkv[blk, :d, (2 * n_heads + h) * dhp:(2 * n_heads + h) * dhp + dh] = \
                wv[:, h * dh:(h + 1) * dh]
            wo[blk, h * dhp:h * dhp + dh, :d] = wor[h * dh:(h + 1) * dh, :]
        for t in range(ksz):
            w1[blk, t, :d, :hid] = _randn(kg, (d, hid), scale)
            w2[blk, t, :hid, :d] = _randn(kg, (hid, d), scale)

    def zeros(*s):
        return jnp.zeros(s, jnp.float32)

    return {
        "wqkv": jnp.asarray(wqkv, MATMUL_DTYPE), "bqkv": zeros(n_blocks, 1, qn),
        "wo": jnp.asarray(wo, MATMUL_DTYPE), "bo": zeros(n_blocks, 1, dp),
        "g1": jnp.asarray(g), "b1": zeros(n_blocks, 1, dp),
        "w1": jnp.asarray(w1, MATMUL_DTYPE), "c1b": zeros(n_blocks, 1, hidp),
        "w2": jnp.asarray(w2, MATMUL_DTYPE), "c2b": zeros(n_blocks, 1, dp),
        "g2": jnp.asarray(g.copy()), "b2": zeros(n_blocks, 1, dp),
    }


def _init_var_predictor(kg, d, filt, ksz, scale=0.1):
    dp, fp = _pad128(d), _pad128(filt)
    w1 = np.zeros((ksz, dp, fp), np.float32)
    w2 = np.zeros((ksz, fp, fp), np.float32)
    for t in range(ksz):
        w1[t, :d, :filt] = _randn(kg, (d, filt), scale)
        w2[t, :filt, :filt] = _randn(kg, (filt, filt), scale)
    g1 = np.zeros((1, fp), np.float32)
    g1[:, :filt] = 1.0
    wl = np.zeros((1, 1, fp), np.float32)
    wl[0, 0, :filt] = _randn(kg, (filt,), scale)
    return {
        "w1": jnp.asarray(w1, MATMUL_DTYPE), "b1": jnp.zeros((1, fp), jnp.float32),
        "g1": jnp.asarray(g1), "bg1": jnp.zeros((1, fp), jnp.float32),
        "w2": jnp.asarray(w2, MATMUL_DTYPE), "b2": jnp.zeros((1, fp), jnp.float32),
        "g2": jnp.asarray(g1.copy()), "bg2": jnp.zeros((1, fp), jnp.float32),
        "wl": jnp.asarray(wl), "bl": jnp.zeros((1, 1), jnp.float32),
    }


def init_fastspeech2(cfg, kg):
    d = cfg["emb_d"]
    enc, dec, vc = cfg["encoder"], cfg["decoder"], cfg["variance_config"]
    dp = _pad128(d)
    dec_in_p = _pad128(dec["in_d"])
    mel_p = _pad128(dec["out_d"])
    V = cfg["phoneme_dict_size"]

    emb = np.zeros((V, dp), np.float32)
    emb[:, :d] = _randn(kg, (V, d))
    emb[cfg["pad_idx"], :] = 0.0

    proj_w = np.zeros((dp, dec_in_p), np.float32)
    proj_w[:vc["out_d"], :dec["in_d"]] = _randn(kg, (vc["out_d"], dec["in_d"]))

    mel_w = np.zeros((dec_in_p, mel_p), np.float32)
    mel_w[:dec["in_d"], :dec["out_d"]] = _randn(kg, (dec["in_d"], dec["out_d"]))

    n_pn = cfg["postnet"]["n_layers"]
    pn_w = np.zeros((n_pn, 5, mel_p, mel_p), np.float32)
    for li in range(n_pn):
        for t in range(5):
            pn_w[li, t, :dec["out_d"], :dec["out_d"]] = \
                _randn(kg, (dec["out_d"], dec["out_d"]))

    ptab = np.zeros((vc["n_bins"], dp), np.float32)
    ptab[:, :d] = _randn(kg, (vc["n_bins"], d))
    etab = np.zeros((vc["n_bins"], dp), np.float32)
    etab[:, :d] = _randn(kg, (vc["n_bins"], d))

    return {
        "emb_table": jnp.asarray(emb, MATMUL_DTYPE),
        "encoder_blocks": _init_fft_stack(kg, enc["n_blocks"], d, enc["hid_d"],
                                          enc["n_heads"], enc["k_size"]),
        "dur_pred": _init_var_predictor(kg, d, vc["filter"], vc["k_size"]),
        "pitch_pred": _init_var_predictor(kg, d, vc["filter"], vc["k_size"]),
        "energy_pred": _init_var_predictor(kg, d, vc["filter"], vc["k_size"]),
        "pitch_table": jnp.asarray(ptab),
        "energy_table": jnp.asarray(etab),
        "projection": {"w": jnp.asarray(proj_w, MATMUL_DTYPE),
                       "b": jnp.zeros((1, dec_in_p), jnp.float32)},
        "decoder_blocks": _init_fft_stack(kg, dec["n_blocks"], dec["in_d"],
                                          dec["hid_d"], dec["n_heads"],
                                          dec["k_size"]),
        "mel_linear": {"w": jnp.asarray(mel_w, MATMUL_DTYPE),
                       "b": jnp.zeros((1, mel_p), jnp.float32)},
        "postnet": {"w": jnp.asarray(pn_w, MATMUL_DTYPE),
                    "b": jnp.zeros((n_pn, 1, mel_p), jnp.float32)},
    }


# ----------------------------------------------------------------------------
# Model glue (plain JAX orchestration of Pallas kernels)
# ----------------------------------------------------------------------------
@functools.lru_cache(maxsize=8)
def sinusoid_pe(L, d, dp):
    pos = jnp.arange(L, dtype=jnp.float32)[:, None]
    i = jnp.arange(d, dtype=jnp.float32)[None, :]
    angle = pos / jnp.power(10000.0, (2.0 * jnp.floor(i / 2.0)) / d)
    pe = jnp.where(jnp.arange(d)[None, :] % 2 == 0, jnp.sin(angle), jnp.cos(angle))
    return jnp.zeros((L, dp), jnp.float32).at[:, :d].set(pe)


def length_regulate(x, durations, mel_len):
    # data-dependent gather kept in plain JAX (fixed total frame count)
    B, L, D = x.shape

    def one(xb, db):
        idx = jnp.repeat(jnp.arange(L), db, total_repeat_length=mel_len)
        return xb[idx]

    return jax.vmap(one)(x, durations)


def bucketize(v, vmin, vmax, n_bins):
    idx = jnp.floor((v - vmin) / (vmax - vmin) * n_bins).astype(jnp.int32)
    return jnp.clip(idx, 0, n_bins - 1)


def fastspeech2_forward(params, cfg, phonemes_onehot, durations, mel_len,
                        duration_alpha=1.0, pitch_alpha=1.0, energy_alpha=1.0):
    """phonemes_onehot: [BS, L, N] one-hot over the phoneme dict."""
    B, L, _ = phonemes_onehot.shape
    d = cfg["emb_d"]
    enc, dec, vc = cfg["encoder"], cfg["decoder"], cfg["variance_config"]
    dp = _pad128(d)
    dh_pad_enc = _pad128(d // enc["n_heads"])
    dh_pad_dec = _pad128(dec["in_d"] // dec["n_heads"])

    # ---------------- Encoder (embedding + PE + FFT blocks, ONE kernel) ------
    pe_enc = sinusoid_pe(L, d, dp)
    x = run_encoder_stack(phonemes_onehot, params["emb_table"], pe_enc,
                          params["encoder_blocks"], n_heads=enc["n_heads"],
                          ksz=enc["k_size"], d_real=d, dh_pad=dh_pad_enc)
    # TODO(synk): text_masks / speaker_embedding are None in this synthetic run.

    # ---------------- Variance adaptor ---------------------------------------
    log_dur_preds = variance_predictor(x, params["dur_pred"],
                                       ksz=vc["k_size"], d_filter=vc["filter"])
    # durations supplied (teacher forcing); duration_alpha applies only when
    # durations are derived from log_dur_preds.
    expanded = length_regulate(x, durations, mel_len)

    pitch_preds = variance_predictor(expanded, params["pitch_pred"],
                                     ksz=vc["k_size"],
                                     d_filter=vc["filter"]) * pitch_alpha
    pidx = bucketize(pitch_preds, vc["pitch_min"], vc["pitch_max"], vc["n_bins"])
    expanded = expanded + params["pitch_table"][pidx]

    energy_preds = variance_predictor(expanded, params["energy_pred"],
                                      ksz=vc["k_size"],
                                      d_filter=vc["filter"]) * energy_alpha
    eidx = bucketize(energy_preds, vc["energy_min"], vc["energy_max"],
                     vc["n_bins"])
    mel_feats = expanded + params["energy_table"][eidx]

    # -------- Decoder (projection + PE + FFT blocks + mel linear, ONE kernel) -
    pe_dec = sinusoid_pe(mel_len, dec["in_d"], _pad128(dec["in_d"]))
    mel_preds_p = run_decoder_stack(mel_feats, pe_dec, params["projection"],
                                    params["decoder_blocks"],
                                    params["mel_linear"],
                                    n_heads=dec["n_heads"], ksz=dec["k_size"],
                                    d_real=dec["in_d"], dh_pad=dh_pad_dec)

    # ---------------- Postnet (all conv layers + residual, ONE kernel) -------
    mel_post_p = postnet_apply(mel_preds_p, params["postnet"], ksz=5)

    out_d = dec["out_d"]
    mel_preds = mel_preds_p[:, :, :out_d]
    mel_postnet_pred = mel_post_p[:, :, :out_d]
    return (mel_postnet_pred, mel_preds, pitch_preds, energy_preds,
            log_dur_preds)


# ----------------------------------------------------------------------------
if __name__ == "__main__":
    cfg = {
        "dropout": 0.1,
        "phoneme_dict_size": 40,
        "pad_idx": 0,
        "emb_d": 32,
        "encoder": {"hid_d": 64, "out_d": 32, "n_blocks": 2, "n_heads": 2,
                    "k_size": 3},
        "variance_config": {
            "out_d": 32, "filter": 32, "k_size": 3, "n_bins": 16,
            "pitch_min": -2.0, "pitch_max": 2.0,
            "energy_min": -2.0, "energy_max": 2.0,
        },
        "decoder": {"in_d": 32, "hid_d": 64, "out_d": 32, "n_blocks": 2,
                    "n_heads": 2, "k_size": 3},
        "postnet": {"n_layers": 3},
    }

    B, L = 2, 8
    kg = KeyGen(0)
    params = init_fastspeech2(cfg, kg)

    key_in = jax.random.PRNGKey(0)
    phoneme_ids = jax.random.randint(key_in, (B, L), 1, cfg["phoneme_dict_size"])
    phonemes_onehot = jax.nn.one_hot(
        phoneme_ids, cfg["phoneme_dict_size"], dtype=jnp.float32)  # [BS, L, N]
    durations = jnp.full((B, L), 2, dtype=jnp.int32)  # each phoneme -> 2 frames
    mel_len = L * 2

    outputs = fastspeech2_forward(
        params, cfg, phonemes_onehot, durations, mel_len,
        duration_alpha=1.0, pitch_alpha=1.0, energy_alpha=1.0)
    jax.block_until_ready(outputs)

    mel_postnet, mel, pitch, energy, log_dur = outputs
    assert mel_postnet.shape == (B, mel_len, cfg["decoder"]["out_d"])
    assert mel.shape == (B, mel_len, cfg["decoder"]["out_d"])
    assert pitch.shape == (B, mel_len)
    assert energy.shape == (B, mel_len)
    assert log_dur.shape == (B, L)
    assert all(bool(jnp.all(jnp.isfinite(o))) for o in outputs)
    print("KERNEL_OK")
</pallas_src>

<mosaic_0001>
module attributes {stable_mosaic.version = 11 : i64} {
  func.func @_encoder_stack_kernel(%arg0: i32, %arg1: memref<2x8x40xf32, #tpu.memory_space<vmem>>, %arg2: memref<40x128xbf16, #tpu.memory_space<vmem>>, %arg3: memref<8x128xf32, #tpu.memory_space<vmem>>, %arg4: memref<1x128x768xbf16, #tpu.memory_space<vmem>>, %arg5: memref<1x1x768xf32, #tpu.memory_space<vmem>>, %arg6: memref<1x256x128xbf16, #tpu.memory_space<vmem>>, %arg7: memref<1x1x128xf32, #tpu.memory_space<vmem>>, %arg8: memref<1x1x128xf32, #tpu.memory_space<vmem>>, %arg9: memref<1x1x128xf32, #tpu.memory_space<vmem>>, %arg10: memref<1x3x128x128xbf16, #tpu.memory_space<vmem>>, %arg11: memref<1x1x128xf32, #tpu.memory_space<vmem>>, %arg12: memref<1x3x128x128xbf16, #tpu.memory_space<vmem>>, %arg13: memref<1x1x128xf32, #tpu.memory_space<vmem>>, %arg14: memref<1x1x128xf32, #tpu.memory_space<vmem>>, %arg15: memref<1x1x128xf32, #tpu.memory_space<vmem>>, %arg16: memref<2x8x128xf32, #tpu.memory_space<vmem>>) attributes {dimension_semantics = [#tpu.dimension_semantics<arbitrary>], iteration_bounds = array<i64: 2>, scalar_prefetch = 0 : i64, scratch_operands = 0 : i64, tpu.core_type = #tpu.core_type<tc>, window_params = [{pipeline_mode = #tpu.pipeline_mode<synchronous>, transform_indices = @transform_0, window_bounds = array<i64: 2, 8, 40>}, {pipeline_mode = #tpu.pipeline_mode<synchronous>, transform_indices = @transform_1, window_bounds = array<i64: 40, 128>}, {pipeline_mode = #tpu.pipeline_mode<synchronous>, transform_indices = @transform_2, window_bounds = array<i64: 8, 128>}, {transform_indices = @transform_3, window_bounds = array<i64: 1, 128, 768>}, {transform_indices = @transform_4, window_bounds = array<i64: 1, 1, 768>}, {transform_indices = @transform_5, window_bounds = array<i64: 1, 256, 128>}, {transform_indices = @transform_6, window_bounds = array<i64: 1, 1, 128>}, {transform_indices = @transform_7, window_bounds = array<i64: 1, 1, 128>}, {transform_indices = @transform_8, window_bounds = array<i64: 1, 1, 128>}, {transform_indices = @transform_9, window_bounds = array<i64: 1, 3, 128, 128>}, {transform_indices = @transform_10, window_bounds = array<i64: 1, 1, 128>}, {transform_indices = @transform_11, window_bounds = array<i64: 1, 3, 128, 128>}, {transform_indices = @transform_12, window_bounds = array<i64: 1, 1, 128>}, {transform_indices = @transform_13, window_bounds = array<i64: 1, 1, 128>}, {transform_indices = @transform_14, window_bounds = array<i64: 1, 1, 128>}, {pipeline_mode = #tpu.pipeline_mode<synchronous>, transform_indices = @transform_15, window_bounds = array<i64: 2, 8, 128>}]} {
    %c0_i32 = arith.constant 0 : i32
    %0 = arith.cmpi eq, %arg0, %c0_i32 : i32
    %1 = arith.extui %0 : i1 to i32
    %c0_i32_0 = arith.constant 0 : i32
    %2 = arith.cmpi ne, %1, %c0_i32_0 : i32
    scf.if %2 {
      %c0_98 = arith.constant 0 : index
      %c0_99 = arith.constant 0 : index
      %c0_100 = arith.constant 0 : index
      %258 = vector.load %arg1[%c0_98, %c0_99, %c0_100] : memref<2x8x40xf32, #tpu.memory_space<vmem>>, vector<2x8x40xf32>
      %259 = vector.shape_cast %258 : vector<2x8x40xf32> to vector<16x40xf32>
      %260 = arith.truncf %259 : vector<16x40xf32> to vector<16x40xbf16>
      %c0_101 = arith.constant 0 : index
      %c0_102 = arith.constant 0 : index
      %261 = vector.load %arg2[%c0_101, %c0_102] : memref<40x128xbf16, #tpu.memory_space<vmem>>, vector<40x128xbf16>
      %cst_103 = arith.constant dense<0.000000e+00> : vector<16x128xf32>
      %262 = tpu.matmul %260, %261, %cst_103 {dimension_numbers = #tpu.dot_dimension_numbers<[1], [0], [0], [1], [0, 0, 1, 1], [], []>} : vector<16x40xbf16>, vector<40x128xbf16>, vector<16x128xf32> -> vector<16x128xf32>
      %263 = vector.shape_cast %262 : vector<16x128xf32> to vector<2x8x128xf32>
      %c0_104 = arith.constant 0 : index
      %c0_105 = arith.constant 0 : index
      %264 = vector.load %arg3[%c0_104, %c0_105] : memref<8x128xf32, #tpu.memory_space<vmem>>, vector<8x128xf32>
      %265 = vector.shape_cast %264 : vector<8x128xf32> to vector<1x8x128xf32>
      %266 = vector.broadcast %265 : vector<1x8x128xf32> to vector<2x8x128xf32>
      %267 = arith.addf %263, %266 : vector<2x8x128xf32>
      %c0_106 = arith.constant 0 : index
      %c0_107 = arith.constant 0 : index
      %c0_108 = arith.constant 0 : index
      %268 = vector.load %arg16[%c0_106, %c0_107, %c0_108] : memref<2x8x128xf32, #tpu.memory_space<vmem>>, vector<2x8x128xf32>
      tpu.vector_store %arg16[%c0_106, %c0_107, %c0_108], %267 {strides = array<i32>} : memref<2x8x128xf32, #tpu.memory_space<vmem>>, vector<2x8x128xf32>,
    } else {
    }
    %c0 = arith.constant 0 : index
    %c0_1 = arith.constant 0 : index
    %c0_2 = arith.constant 0 : index
    %3 = vector.load %arg16[%c0, %c0_1, %c0_2] : memref<2x8x128xf32, #tpu.memory_space<vmem>>, vector<2x8x128xf32>
    %4 = vector.shape_cast %3 : vector<2x8x128xf32> to vector<16x128xf32>
    %c0_3 = arith.constant 0 : index
    %c0_4 = arith.constant 0 : index
    %c0_5 = arith.constant 0 : index
    %5 = vector.load %arg4[%c0_3, %c0_4, %c0_5] : memref<1x128x768xbf16, #tpu.memory_space<vmem>>, vector<1x128x768xbf16>
    %6 = vector.shape_cast %5 : vector<1x128x768xbf16> to vector<128x768xbf16>
    %c0_6 = arith.constant 0 : index
    %c0_7 = arith.constant 0 : index
    %c0_8 = arith.constant 0 : index
    %7 = vector.load %arg5[%c0_6, %c0_7, %c0_8] : memref<1x1x768xf32, #tpu.memory_space<vmem>>, vector<1x1x768xf32>
    %8 = vector.shape_cast %7 : vector<1x1x768xf32> to vector<1x768xf32>
    %c0_9 = arith.constant 0 : index
    %c0_10 = arith.constant 0 : index
    %c0_11 = arith.constant 0 : index
    %9 = vector.load %arg6[%c0_9, %c0_10, %c0_11] : memref<1x256x128xbf16, #tpu.memory_space<vmem>>, vector<1x256x128xbf16>
    %10 = vector.shape_cast %9 : vector<1x256x128xbf16> to vector<256x128xbf16>
    %c0_12 = arith.constant 0 : index
    %c0_13 = arith.constant 0 : index
    %c0_14 = arith.constant 0 : index
    %11 = vector.load %arg7[%c0_12, %c0_13, %c0_14] : memref<1x1x128xf32, #tpu.memory_space<vmem>>, vector<1x1x128xf32>
    %12 = vector.shape_cast %11 : vector<1x1x128xf32> to vector<1x128xf32>
    %c0_15 = arith.constant 0 : index
    %c0_16 = arith.constant 0 : index
    %c0_17 = arith.constant 0 : index
    %13 = vector.load %arg8[%c0_15, %c0_16, %c0_17] : memref<1x1x128xf32, #tpu.memory_space<vmem>>, vector<1x1x128xf32>
    %14 = vector.shape_cast %13 : vector<1x1x128xf32> to vector<1x128xf32>
    %c0_18 = arith.constant 0 : index
    %c0_19 = arith.constant 0 : index
    %c0_20 = arith.constant 0 : index
    %15 = vector.load %arg9[%c0_18, %c0_19, %c0_20] : memref<1x1x128xf32, #tpu.memory_space<vmem>>, vector<1x1x128xf32>
    %16 = vector.shape_cast %15 : vector<1x1x128xf32> to vector<1x128xf32>
    %c0_21 = arith.constant 0 : index
    %c0_22 = arith.constant 0 : index
    %c0_23 = arith.constant 0 : index
    %c0_24 = arith.constant 0 : index
    %17 = vector.load %arg10[%c0_21, %c0_22, %c0_23, %c0_24] : memref<1x3x128x128xbf16, #tpu.memory_space<vmem>>, vector<1x3x128x128xbf16>
    %18 = vector.shape_cast %17 : vector<1x3x128x128xbf16> to vector<3x128x128xbf16>
    %c0_25 = arith.constant 0 : index
    %c0_26 = arith.constant 0 : index
    %c0_27 = arith.constant 0 : index
    %19 = vector.load %arg11[%c0_25, %c0_26, %c0_27] : memref<1x1x128xf32, #tpu.memory_space<vmem>>, vector<1x1x128xf32>
    %20 = vector.shape_cast %19 : vector<1x1x128xf32> to vector<1x128xf32>
    %c0_28 = arith.constant 0 : index
    %c0_29 = arith.constant 0 : index
    %c0_30 = arith.constant 0 : index
    %c0_31 = arith.constant 0 : index
    %21 = vector.load %arg12[%c0_28, %c0_29, %c0_30, %c0_31] : memref<1x3x128x128xbf16, #tpu.memory_space<vmem>>, vector<1x3x128x128xbf16>
    %22 = vector.shape_cast %21 : vector<1x3x128x128xbf16> to vector<3x128x128xbf16>
    %c0_32 = arith.constant 0 : index
    %c0_33 = arith.constant 0 : index
    %c0_34 = arith.constant 0 : index
    %23 = vector.load %arg13[%c0_32, %c0_33, %c0_34] : memref<1x1x128xf32, #tpu.memory_space<vmem>>, vector<1x1x128xf32>
    %24 = vector.shape_cast %23 : vector<1x1x128xf32> to vector<1x128xf32>
    %c0_35 = arith.constant 0 : index
    %c0_36 = arith.constant 0 : index
    %c0_37 = arith.constant 0 : index
    %25 = vector.load %arg14[%c0_35, %c0_36, %c0_37] : memref<1x1x128xf32, #tpu.memory_space<vmem>>, vector<1x1x128xf32>
    %26 = vector.shape_cast %25 : vector<1x1x128xf32> to vector<1x128xf32>
    %c0_38 = arith.constant 0 : index
    %c0_39 = arith.constant 0 : index
    %c0_40 = arith.constant 0 : index
    %27 = vector.load %arg15[%c0_38, %c0_39, %c0_40] : memref<1x1x128xf32, #tpu.memory_space<vmem>>, vector<1x1x128xf32>
    %28 = vector.shape_cast %27 : vector<1x1x128xf32> to vector<1x128xf32>
    %29 = arith.truncf %4 : vector<16x128xf32> to vector<16x128xbf16>
    %cst = arith.constant dense<0.000000e+00> : vector<16x768xf32>
    %30 = tpu.matmul %29, %6, %cst {dimension_numbers = #tpu.dot_dimension_numbers<[1], [0], [0], [1], [0, 0, 1, 1], [], []>} : vector<16x128xbf16>, vector<128x768xbf16>, vector<16x768xf32> -> vector<16x768xf32>
    %31 = vector.broadcast %8 : vector<1x768xf32> to vector<16x768xf32>
    %32 = arith.addf %30, %31 : vector<16x768xf32>
    %cst_41 = arith.constant 0.000000e+00 : f32
    %33 = vector.broadcast %cst_41 : f32 to vector<16x128xf32>
    %34 = vector.extract_strided_slice %32 {offsets = [0, 0], sizes = [16, 128], strides = [1, 1]} : vector<16x768xf32> to vector<16x128xf32>
    %35 = vector.shape_cast %34 : vector<16x128xf32> to vector<2x8x128xf32>
    %36 = vector.extract_strided_slice %32 {offsets = [0, 256], sizes = [16, 128], strides = [1, 1]} : vector<16x768xf32> to vector<16x128xf32>
    %37 = vector.shape_cast %36 : vector<16x128xf32> to vector<2x8x128xf32>
    %38 = vector.extract_strided_slice %32 {offsets = [0, 512], sizes = [16, 128], strides = [1, 1]} : vector<16x768xf32> to vector<16x128xf32>
    %39 = vector.shape_cast %38 : vector<16x128xf32> to vector<2x8x128xf32>
    %40 = arith.truncf %35 : vector<2x8x128xf32> to vector<2x8x128xbf16>
    %41 = arith.truncf %37 : vector<2x8x128xf32> to vector<2x8x128xbf16>
    "tpu.trace_start"() <{level = 10 : i32, message = "bqd,bkd->bqk"}> : () -> ()
    %cst_42 = arith.constant dense<0.000000e+00> : vector<2x8x8xf32>
    %42 = tpu.matmul %40, %41, %cst_42 {dimension_numbers = #tpu.dot_dimension_numbers<[2], [2], [1], [1], [0, 0, 0, 1, 1, 1], [0], [0]>} : vector<2x8x128xbf16>, vector<2x8x128xbf16>, vector<2x8x8xf32> -> vector<2x8x8xf32>
    "tpu.trace_stop"() : () -> ()
    %cst_43 = arith.constant dense<0xFF800000> : vector<2x8xf32>
    %43 = vector.multi_reduction <maximumf>, %42, %cst_43 [2] : vector<2x8x8xf32> to vector<2x8xf32>
    %44 = vector.shape_cast %43 : vector<2x8xf32> to vector<2x8x1xf32>
    %45 = vector.broadcast %44 : vector<2x8x1xf32> to vector<2x8x8xf32>
    %46 = arith.subf %42, %45 : vector<2x8x8xf32>
    %47 = math.exp %46 : vector<2x8x8xf32>
    %cst_44 = arith.constant dense<0.000000e+00> : vector<2x8xf32>
    %48 = vector.multi_reduction <add>, %47, %cst_44 [2] : vector<2x8x8xf32> to vector<2x8xf32>
    %49 = vector.shape_cast %48 : vector<2x8xf32> to vector<2x8x1xf32>
    %50 = tpu.reciprocal %49 {approx = true} : vector<2x8x1xf32> -> vector<2x8x1xf32>
    %51 = vector.broadcast %50 : vector<2x8x1xf32> to vector<2x8x8xf32>
    %52 = arith.mulf %47, %51 : vector<2x8x8xf32>
    %53 = arith.truncf %52 : vector<2x8x8xf32> to vector<2x8x8xbf16>
    %54 = arith.truncf %39 : vector<2x8x128xf32> to vector<2x8x128xbf16>
    "tpu.trace_start"() <{level = 10 : i32, message = "bqk,bkd->bqd"}> : () -> ()
    %cst_45 = arith.constant dense<0.000000e+00> : vector<2x8x128xf32>
    %55 = tpu.matmul %53, %54, %cst_45 {dimension_numbers = #tpu.dot_dimension_numbers<[2], [1], [1], [2], [0, 0, 0, 1, 1, 2], [0], [0]>} : vector<2x8x8xbf16>, vector<2x8x128xbf16>, vector<2x8x128xf32> -> vector<2x8x128xf32>
    "tpu.trace_stop"() : () -> ()
    %56 = vector.shape_cast %55 : vector<2x8x128xf32> to vector<16x128xf32>
    %57 = arith.truncf %56 : vector<16x128xf32> to vector<16x128xbf16>
    %58 = vector.extract_strided_slice %10 {offsets = [0, 0], sizes = [128, 128], strides = [1, 1]} : vector<256x128xbf16> to vector<128x128xbf16>
    %cst_46 = arith.constant dense<0.000000e+00> : vector<16x128xf32>
    %59 = tpu.matmul %57, %58, %cst_46 {dimension_numbers = #tpu.dot_dimension_numbers<[1], [0], [0], [1], [0, 0, 1, 1], [], []>} : vector<16x128xbf16>, vector<128x128xbf16>, vector<16x128xf32> -> vector<16x128xf32>
    %60 = arith.addf %33, %59 : vector<16x128xf32>
    %61 = vector.extract_strided_slice %32 {offsets = [0, 128], sizes = [16, 128], strides = [1, 1]} : vector<16x768xf32> to vector<16x128xf32>
    %62 = vector.shape_cast %61 : vector<16x128xf32> to vector<2x8x128xf32>
    %63 = vector.extract_strided_slice %32 {offsets = [0, 384], sizes = [16, 128], strides = [1, 1]} : vector<16x768xf32> to vector<16x128xf32>
    %64 = vector.shape_cast %63 : vector<16x128xf32> to vector<2x8x128xf32>
    %65 = vector.extract_strided_slice %32 {offsets = [0, 640], sizes = [16, 128], strides = [1, 1]} : vector<16x768xf32> to vector<16x128xf32>
    %66 = vector.shape_cast %65 : vector<16x128xf32> to vector<2x8x128xf32>
    %67 = arith.truncf %62 : vector<2x8x128xf32> to vector<2x8x128xbf16>
    %68 = arith.truncf %64 : vector<2x8x128xf32> to vector<2x8x128xbf16>
    "tpu.trace_start"() <{level = 10 : i32, message = "bqd,bkd->bqk"}> : () -> ()
    %cst_47 = arith.constant dense<0.000000e+00> : vector<2x8x8xf32>
    %69 = tpu.matmul %67, %68, %cst_47 {dimension_numbers = #tpu.dot_dimension_numbers<[2], [2], [1], [1], [0, 0, 0, 1, 1, 1], [0], [0]>} : vector<2x8x128xbf16>, vector<2x8x128xbf16>, vector<2x8x8xf32> -> vector<2x8x8xf32>
    "tpu.trace_stop"() : () -> ()
    %cst_48 = arith.constant dense<0xFF800000> : vector<2x8xf32>
    %70 = vector.multi_reduction <maximumf>, %69, %cst_48 [2] : vector<2x8x8xf32> to vector<2x8xf32>
    %71 = vector.shape_cast %70 : vector<2x8xf32> to vector<2x8x1xf32>
    %72 = vector.broadcast %71 : vector<2x8x1xf32> to vector<2x8x8xf32>
    %73 = arith.subf %69, %72 : vector<2x8x8xf32>
    %74 = math.exp %73 : vector<2x8x8xf32>
    %cst_49 = arith.constant dense<0.000000e+00> : vector<2x8xf32>
    %75 = vector.multi_reduction <add>, %74, %cst_49 [2] : vector<2x8x8xf32> to vector<2x8xf32>
    %76 = vector.shape_cast %75 : vector<2x8xf32> to vector<2x8x1xf32>
    %77 = tpu.reciprocal %76 {approx = true} : vector<2x8x1xf32> -> vector<2x8x1xf32>
    %78 = vector.broadcast %77 : vector<2x8x1xf32> to vector<2x8x8xf32>
    %79 = arith.mulf %74, %78 : vector<2x8x8xf32>
    %80 = arith.truncf %79 : vector<2x8x8xf32> to vector<2x8x8xbf16>
    %81 = arith.truncf %66 : vector<2x8x128xf32> to vector<2x8x128xbf16>
    "tpu.trace_start"() <{level = 10 : i32, message = "bqk,bkd->bqd"}> : () -> ()
    %cst_50 = arith.constant dense<0.000000e+00> : vector<2x8x128xf32>
    %82 = tpu.matmul %80, %81, %cst_50 {dimension_numbers = #tpu.dot_dimension_numbers<[2], [1], [1], [2], [0, 0, 0, 1, 1, 2], [0], [0]>} : vector<2x8x8xbf16>, vector<2x8x128xbf16>, vector<2x8x128xf32> -> vector<2x8x128xf32>
    "tpu.trace_stop"() : () -> ()
    %83 = vector.shape_cast %82 : vector<2x8x128xf32> to vector<16x128xf32>
    %84 = arith.truncf %83 : vector<16x128xf32> to vector<16x128xbf16>
    %85 = vector.extract_strided_slice %10 {offsets = [128, 0], sizes = [128, 128], strides = [1, 1]} : vector<256x128xbf16> to vector<128x128xbf16>
    %cst_51 = arith.constant dense<0.000000e+00> : vector<16x128xf32>
    %86 = tpu.matmul %84, %85, %cst_51 {dimension_numbers = #tpu.dot_dimension_numbers<[1], [0], [0], [1], [0, 0, 1, 1], [], []>} : vector<16x128xbf16>, vector<128x128xbf16>, vector<16x128xf32> -> vector<16x128xf32>
    %87 = arith.addf %60, %86 : vector<16x128xf32>
    %88 = vector.broadcast %12 : vector<1x128xf32> to vector<16x128xf32>
    %89 = arith.addf %87, %88 : vector<16x128xf32>
    %90 = arith.addf %4, %89 : vector<16x128xf32>
    %cst_52 = arith.constant dense<0.000000e+00> : vector<16xf32>
    %91 = vector.multi_reduction <add>, %90, %cst_52 [1] : vector<16x128xf32> to vector<16xf32>
    %92 = vector.shape_cast %91 : vector<16xf32> to vector<16x1xf32>
    %cst_53 = arith.constant 3.125000e-02 : f32
    %93 = vector.broadcast %cst_53 : f32 to vector<16x1xf32>
    %94 = arith.mulf %92, %93 : vector<16x1xf32>
    %95 = arith.mulf %90, %90 : vector<16x128xf32>
    %cst_54 = arith.constant dense<0.000000e+00> : vector<16xf32>
    %96 = vector.multi_reduction <add>, %95, %cst_54 [1] : vector<16x128xf32> to vector<16xf32>
    %97 = vector.shape_cast %96 : vector<16xf32> to vector<16x1xf32>
    %cst_55 = arith.constant 3.125000e-02 : f32
    %98 = vector.broadcast %cst_55 : f32 to vector<16x1xf32>
    %99 = arith.mulf %97, %98 : vector<16x1xf32>
    %100 = arith.mulf %94, %94 : vector<16x1xf32>
    %101 = arith.subf %99, %100 : vector<16x1xf32>
    %102 = vector.broadcast %94 : vector<16x1xf32> to vector<16x128xf32>
    %103 = arith.subf %90, %102 : vector<16x128xf32>
    %cst_56 = arith.constant 9.99999974E-6 : f32
    %104 = vector.broadcast %cst_56 : f32 to vector<16x1xf32>
    %105 = arith.addf %101, %104 : vector<16x1xf32>
    %106 = math.rsqrt %105 : vector<16x1xf32>
    %107 = vector.broadcast %106 : vector<16x1xf32> to vector<16x128xf32>
    %108 = arith.mulf %103, %107 : vector<16x128xf32>
    %109 = vector.broadcast %14 : vector<1x128xf32> to vector<16x128xf32>
    %110 = arith.mulf %108, %109 : vector<16x128xf32>
    %111 = vector.broadcast %16 : vector<1x128xf32> to vector<16x128xf32>
    %112 = arith.addf %110, %111 : vector<16x128xf32>
    %113 = tpu.iota {dimensions = array<i32: 0>} : vector<16x1xi32>
    %c8_i32 = arith.constant 8 : i32
    %c0_i32_57 = arith.constant 0 : i32
    %114 = arith.cmpi eq, %c8_i32, %c0_i32_57 : i32
    %c1_i32 = arith.constant 1 : i32
    %115 = arith.select %114, %c1_i32, %c8_i32 : i32
    %116 = vector.broadcast %115 : i32 to vector<16x1xi32>
    %117 = arith.remsi %113, %116 : vector<16x1xi32>
    %c0_i32_58 = arith.constant 0 : i32
    %118 = vector.broadcast %c0_i32_58 : i32 to vector<16x1xi32>
    %119 = arith.cmpi ne, %117, %118 : vector<16x1xi32>
    %c0_i32_59 = arith.constant 0 : i32
    %120 = vector.broadcast %c0_i32_59 : i32 to vector<16x1xi32>
    %121 = arith.cmpi slt, %117, %120 : vector<16x1xi32>
    %c0_i32_60 = arith.constant 0 : i32
    %122 = arith.cmpi slt, %115, %c0_i32_60 : i32
    %123 = vector.broadcast %122 : i1 to vector<16x1xi1>
    %124 = vector.broadcast %123 : vector<16x1xi1> to vector<16x1xi1>
    %125 = arith.xori %121, %124 : vector<16x1xi1>
    %126 = arith.andi %125, %119 : vector<16x1xi1>
    %127 = vector.broadcast %115 : i32 to vector<16x1xi32>
    %128 = arith.addi %117, %127 : vector<16x1xi32>
    %129 = arith.select %126, %128, %117 : vector<16x1xi1>, vector<16x1xi32>
    %cst_61 = arith.constant 0.000000e+00 : f32
    %130 = vector.broadcast %cst_61 : f32 to vector<16x128xf32>
    %131 = vector.broadcast %20 : vector<1x128xf32> to vector<16x128xf32>
    %132 = arith.addf %130, %131 : vector<16x128xf32>
    %c1_i32_62 = arith.constant 1 : i32
    %133 = tpu.dynamic_rotate %112 by %c1_i32_62 dim 0 : vector<16x128xf32>, i32 -> vector<16x128xf32>
    %c-1_i32 = arith.constant -1 : i32
    %134 = vector.broadcast %c-1_i32 : i32 to vector<16x1xi32>
    %135 = arith.addi %129, %134 : vector<16x1xi32>
    %c0_i32_63 = arith.constant 0 : i32
    %136 = vector.broadcast %c0_i32_63 : i32 to vector<16x1xi32>
    %137 = arith.cmpi sge, %135, %136 : vector<16x1xi32>
    %c8_i32_64 = arith.constant 8 : i32
    %138 = vector.broadcast %c8_i32_64 : i32 to vector<16x1xi32>
    %139 = arith.cmpi slt, %135, %138 : vector<16x1xi32>
    %140 = arith.andi %137, %139 : vector<16x1xi1>
    %141 = arith.extui %140 : vector<16x1xi1> to vector<16x1xi32>
    %142 = arith.sitofp %141 : vector<16x1xi32> to vector<16x1xf32>
    %143 = vector.broadcast %142 : vector<16x1xf32> to vector<16x128xf32>
    %144 = arith.mulf %133, %143 : vector<16x128xf32>
    %145 = arith.truncf %144 : vector<16x128xf32> to vector<16x128xbf16>
    %146 = vector.extract_strided_slice %18 {offsets = [0, 0, 0], sizes = [1, 128, 128], strides = [1, 1, 1]} : vector<3x128x128xbf16> to vector<1x128x128xbf16>
    %147 = vector.shape_cast %146 : vector<1x128x128xbf16> to vector<128x128xbf16>
    %cst_65 = arith.constant dense<0.000000e+00> : vector<16x128xf32>
    %148 = tpu.matmul %145, %147, %cst_65 {dimension_numbers = #tpu.dot_dimension_numbers<[1], [0], [0], [1], [0, 0, 1, 1], [], []>} : vector<16x128xbf16>, vector<128x128xbf16>, vector<16x128xf32> -> vector<16x128xf32>
    %149 = arith.addf %132, %148 : vector<16x128xf32>
    %150 = arith.truncf %112 : vector<16x128xf32> to vector<16x128xbf16>
    %151 = vector.extract_strided_slice %18 {offsets = [1, 0, 0], sizes = [1, 128, 128], strides = [1, 1, 1]} : vector<3x128x128xbf16> to vector<1x128x128xbf16>
    %152 = vector.shape_cast %151 : vector<1x128x128xbf16> to vector<128x128xbf16>
    %cst_66 = arith.constant dense<0.000000e+00> : vector<16x128xf32>
    %153 = tpu.matmul %150, %152, %cst_66 {dimension_numbers = #tpu.dot_dimension_numbers<[1], [0], [0], [1], [0, 0, 1, 1], [], []>} : vector<16x128xbf16>, vector<128x128xbf16>, vector<16x128xf32> -> vector<16x128xf32>
    %154 = arith.addf %149, %153 : vector<16x128xf32>
    %c15_i32 = arith.constant 15 : i32
    %155 = tpu.dynamic_rotate %112 by %c15_i32 dim 0 : vector<16x128xf32>, i32 -> vector<16x128xf32>
    %c1_i32_67 = arith.constant 1 : i32
    %156 = vector.broadcast %c1_i32_67 : i32 to vector<16x1xi32>
    %157 = arith.addi %129, %156 : vector<16x1xi32>
    %c0_i32_68 = arith.constant 0 : i32
    %158 = vector.broadcast %c0_i32_68 : i32 to vector<16x1xi32>
    %159 = arith.cmpi sge, %157, %158 : vector<16x1xi32>
    %c8_i32_69 = arith.constant 8 : i32
    %160 = vector.broadcast %c8_i32_69 : i32 to vector<16x1xi32>
    %161 = arith.cmpi slt, %157, %160 : vector<16x1xi32>
    %162 = arith.andi %159, %161 : vector<16x1xi1>
    %163 = arith.extui %162 : vector<16x1xi1> to vector<16x1xi32>
    %164 = arith.sitofp %163 : vector<16x1xi32> to vector<16x1xf32>
    %165 = vector.broadcast %164 : vector<16x1xf32> to vector<16x128xf32>
    %166 = arith.mulf %155, %165 : vector<16x128xf32>
    %167 = arith.truncf %166 : vector<16x128xf32> to vector<16x128xbf16>
    %168 = vector.extract_strided_slice %18 {offsets = [2, 0, 0], sizes = [1, 128, 128], strides = [1, 1, 1]} : vector<3x128x128xbf16> to vector<1x128x128xbf16>
    %169 = vector.shape_cast %168 : vector<1x128x128xbf16> to vector<128x128xbf16>
    %cst_70 = arith.constant dense<0.000000e+00> : vector<16x128xf32>
    %170 = tpu.matmul %167, %169, %cst_70 {dimension_numbers = #tpu.dot_dimension_numbers<[1], [0], [0], [1], [0, 0, 1, 1], [], []>} : vector<16x128xbf16>, vector<128x128xbf16>, vector<16x128xf32> -> vector<16x128xf32>
    %171 = arith.addf %154, %170 : vector<16x128xf32>
    %cst_71 = arith.constant 0.000000e+00 : f32
    %172 = vector.broadcast %cst_71 : f32 to vector<16x128xf32>
    %173 = arith.maximumf %171, %172 : vector<16x128xf32>
    %174 = tpu.iota {dimensions = array<i32: 0>} : vector<16x1xi32>
    %c8_i32_72 = arith.constant 8 : i32
    %c0_i32_73 = arith.constant 0 : i32
    %175 = arith.cmpi eq, %c8_i32_72, %c0_i32_73 : i32
    %c1_i32_74 = arith.constant 1 : i32
    %176 = arith.select %175, %c1_i32_74, %c8_i32_72 : i32
    %177 = vector.broadcast %176 : i32 to vector<16x1xi32>
    %178 = arith.remsi %174, %177 : vector<16x1xi32>
    %c0_i32_75 = arith.constant 0 : i32
    %179 = vector.broadcast %c0_i32_75 : i32 to vector<16x1xi32>
    %180 = arith.cmpi ne, %178, %179 : vector<16x1xi32>
    %c0_i32_76 = arith.constant 0 : i32
    %181 = vector.broadcast %c0_i32_76 : i32 to vector<16x1xi32>
    %182 = arith.cmpi slt, %178, %181 : vector<16x1xi32>
    %c0_i32_77 = arith.constant 0 : i32
    %183 = arith.cmpi slt, %176, %c0_i32_77 : i32
    %184 = vector.broadcast %183 : i1 to vector<16x1xi1>
    %185 = vector.broadcast %184 : vector<16x1xi1> to vector<16x1xi1>
    %186 = arith.xori %182, %185 : vector<16x1xi1>
    %187 = arith.andi %186, %180 : vector<16x1xi1>
    %188 = vector.broadcast %176 : i32 to vector<16x1xi32>
    %189 = arith.addi %178, %188 : vector<16x1xi32>
    %190 = arith.select %187, %189, %178 : vector<16x1xi1>, vector<16x1xi32>
    %cst_78 = arith.constant 0.000000e+00 : f32
    %191 = vector.broadcast %cst_78 : f32 to vector<16x128xf32>
    %192 = vector.broadcast %24 : vector<1x128xf32> to vector<16x128xf32>
    %193 = arith.addf %191, %192 : vector<16x128xf32>
    %c1_i32_79 = arith.constant 1 : i32
    %194 = tpu.dynamic_rotate %173 by %c1_i32_79 dim 0 : vector<16x128xf32>, i32 -> vector<16x128xf32>
    %c-1_i32_80 = arith.constant -1 : i32
    %195 = vector.broadcast %c-1_i32_80 : i32 to vector<16x1xi32>
    %196 = arith.addi %190, %195 : vector<16x1xi32>
    %c0_i32_81 = arith.constant 0 : i32
    %197 = vector.broadcast %c0_i32_81 : i32 to vector<16x1xi32>
    %198 = arith.cmpi sge, %196, %197 : vector<16x1xi32>
    %c8_i32_82 = arith.constant 8 : i32
    %199 = vector.broadcast %c8_i32_82 : i32 to vector<16x1xi32>
    %200 = arith.cmpi slt, %196, %199 : vector<16x1xi32>
    %201 = arith.andi %198, %200 : vector<16x1xi1>
    %202 = arith.extui %201 : vector<16x1xi1> to vector<16x1xi32>
    %203 = arith.sitofp %202 : vector<16x1xi32> to vector<16x1xf32>
    %204 = vector.broadcast %203 : vector<16x1xf32> to vector<16x128xf32>
    %205 = arith.mulf %194, %204 : vector<16x128xf32>
    %206 = arith.truncf %205 : vector<16x128xf32> to vector<16x128xbf16>
    %207 = vector.extract_strided_slice %22 {offsets = [0, 0, 0], sizes = [1, 128, 128], strides = [1, 1, 1]} : vector<3x128x128xbf16> to vector<1x128x128xbf16>
    %208 = vector.shape_cast %207 : vector<1x128x128xbf16> to vector<128x128xbf16>
    %cst_83 = arith.constant dense<0.000000e+00> : vector<16x128xf32>
    %209 = tpu.matmul %206, %208, %cst_83 {dimension_numbers = #tpu.dot_dimension_numbers<[1], [0], [0], [1], [0, 0, 1, 1], [], []>} : vector<16x128xbf16>, vector<128x128xbf16>, vector<16x128xf32> -> vector<16x128xf32>
    %210 = arith.addf %193, %209 : vector<16x128xf32>
    %211 = arith.truncf %173 : vector<16x128xf32> to vector<16x128xbf16>
    %212 = vector.extract_strided_slice %22 {offsets = [1, 0, 0], sizes = [1, 128, 128], strides = [1, 1, 1]} : vector<3x128x128xbf16> to vector<1x128x128xbf16>
    %213 = vector.shape_cast %212 : vector<1x128x128xbf16> to vector<128x128xbf16>
    %cst_84 = arith.constant dense<0.000000e+00> : vector<16x128xf32>
    %214 = tpu.matmul %211, %213, %cst_84 {dimension_numbers = #tpu.dot_dimension_numbers<[1], [0], [0], [1], [0, 0, 1, 1], [], []>} : vector<16x128xbf16>, vector<128x128xbf16>, vector<16x128xf32> -> vector<16x128xf32>
    %215 = arith.addf %210, %214 : vector<16x128xf32>
    %c15_i32_85 = arith.constant 15 : i32
    %216 = tpu.dynamic_rotate %173 by %c15_i32_85 dim 0 : vector<16x128xf32>, i32 -> vector<16x128xf32>
    %c1_i32_86 = arith.constant 1 : i32
    %217 = vector.broadcast %c1_i32_86 : i32 to vector<16x1xi32>
    %218 = arith.addi %190, %217 : vector<16x1xi32>
    %c0_i32_87 = arith.constant 0 : i32
    %219 = vector.broadcast %c0_i32_87 : i32 to vector<16x1xi32>
    %220 = arith.cmpi sge, %218, %219 : vector<16x1xi32>
    %c8_i32_88 = arith.constant 8 : i32
    %221 = vector.broadcast %c8_i32_88 : i32 to vector<16x1xi32>
    %222 = arith.cmpi slt, %218, %221 : vector<16x1xi32>
    %223 = arith.andi %220, %222 : vector<16x1xi1>
    %224 = arith.extui %223 : vector<16x1xi1> to vector<16x1xi32>
    %225 = arith.sitofp %224 : vector<16x1xi32> to vector<16x1xf32>
    %226 = vector.broadcast %225 : vector<16x1xf32> to vector<16x128xf32>
    %227 = arith.mulf %216, %226 : vector<16x128xf32>
    %228 = arith.truncf %227 : vector<16x128xf32> to vector<16x128xbf16>
    %229 = vector.extract_strided_slice %22 {offsets = [2, 0, 0], sizes = [1, 128, 128], strides = [1, 1, 1]} : vector<3x128x128xbf16> to vector<1x128x128xbf16>
    %230 = vector.shape_cast %229 : vector<1x128x128xbf16> to vector<128x128xbf16>
    %cst_89 = arith.constant dense<0.000000e+00> : vector<16x128xf32>
    %231 = tpu.matmul %228, %230, %cst_89 {dimension_numbers = #tpu.dot_dimension_numbers<[1], [0], [0], [1], [0, 0, 1, 1], [], []>} : vector<16x128xbf16>, vector<128x128xbf16>, vector<16x128xf32> -> vector<16x128xf32>
    %232 = arith.addf %215, %231 : vector<16x128xf32>
    %233 = arith.addf %112, %232 : vector<16x128xf32>
    %cst_90 = arith.constant dense<0.000000e+00> : vector<16xf32>
    %234 = vector.multi_reduction <add>, %233, %cst_90 [1] : vector<16x128xf32> to vector<16xf32>
    %235 = vector.shape_cast %234 : vector<16xf32> to vector<16x1xf32>
    %cst_91 = arith.constant 3.125000e-02 : f32
    %236 = vector.broadcast %cst_91 : f32 to vector<16x1xf32>
    %237 = arith.mulf %235, %236 : vector<16x1xf32>
    %238 = arith.mulf %233, %233 : vector<16x128xf32>
    %cst_92 = arith.constant dense<0.000000e+00> : vector<16xf32>
    %239 = vector.multi_reduction <add>, %238, %cst_92 [1] : vector<16x128xf32> to vector<16xf32>
    %240 = vector.shape_cast %239 : vector<16xf32> to vector<16x1xf32>
    %cst_93 = arith.constant 3.125000e-02 : f32
    %241 = vector.broadcast %cst_93 : f32 to vector<16x1xf32>
    %242 = arith.mulf %240, %241 : vector<16x1xf32>
    %243 = arith.mulf %237, %237 : vector<16x1xf32>
    %244 = arith.subf %242, %243 : vector<16x1xf32>
    %245 = vector.broadcast %237 : vector<16x1xf32> to vector<16x128xf32>
    %246 = arith.subf %233, %245 : vector<16x128xf32>
    %cst_94 = arith.constant 9.99999974E-6 : f32
    %247 = vector.broadcast %cst_94 : f32 to vector<16x1xf32>
    %248 = arith.addf %244, %247 : vector<16x1xf32>
    %249 = math.rsqrt %248 : vector<16x1xf32>
    %250 = vector.broadcast %249 : vector<16x1xf32> to vector<16x128xf32>
    %251 = arith.mulf %246, %250 : vector<16x128xf32>
    %252 = vector.broadcast %26 : vector<1x128xf32> to vector<16x128xf32>
    %253 = arith.mulf %251, %252 : vector<16x128xf32>
    %254 = vector.broadcast %28 : vector<1x128xf32> to vector<16x128xf32>
    %255 = arith.addf %253, %254 : vector<16x128xf32>
    %256 = vector.shape_cast %255 : vector<16x128xf32> to vector<2x8x128xf32>
    %c0_95 = arith.constant 0 : index
    %c0_96 = arith.constant 0 : index
    %c0_97 = arith.constant 0 : index
    %257 = vector.load %arg16[%c0_95, %c0_96, %c0_97] : memref<2x8x128xf32, #tpu.memory_space<vmem>>, vector<2x8x128xf32>
    tpu.vector_store %arg16[%c0_95, %c0_96, %c0_97], %256 {strides = array<i32>} : memref<2x8x128xf32, #tpu.memory_space<vmem>>, vector<2x8x128xf32>,
    return
  }
  func.func @transform_0(%arg0: i32) -> (i32, i32, i32) {
    %c0_i32 = arith.constant 0 : i32
    %c0_i32_0 = arith.constant 0 : i32
    %c0_i32_1 = arith.constant 0 : i32
    %c0_i32_2 = arith.constant 0 : i32
    return %c0_i32, %c0_i32_0, %c0_i32_1 : i32, i32, i32
  }
  func.func @transform_1(%arg0: i32) -> (i32, i32) {
    %c0_i32 = arith.constant 0 : i32
    %c0_i32_0 = arith.constant 0 : i32
    %c0_i32_1 = arith.constant 0 : i32
    return %c0_i32, %c0_i32_0 : i32, i32
  }
  func.func @transform_2(%arg0: i32) -> (i32, i32) {
    %c0_i32 = arith.constant 0 : i32
    %c0_i32_0 = arith.constant 0 : i32
    %c0_i32_1 = arith.constant 0 : i32
    return %c0_i32, %c0_i32_0 : i32, i32
  }
  func.func @transform_3(%arg0: i32) -> (i32, i32, i32) {
    %c0_i32 = arith.constant 0 : i32
    %c0_i32_0 = arith.constant 0 : i32
    %c0_i32_1 = arith.constant 0 : i32
    return %arg0, %c0_i32, %c0_i32_0 : i32, i32, i32
  }
  func.func @transform_4(%arg0: i32) -> (i32, i32, i32) {
    %c0_i32 = arith.constant 0 : i32
    %c0_i32_0 = arith.constant 0 : i32
    %c0_i32_1 = arith.constant 0 : i32
    return %arg0, %c0_i32, %c0_i32_0 : i32, i32, i32
  }
  func.func @transform_5(%arg0: i32) -> (i32, i32, i32) {
    %c0_i32 = arith.constant 0 : i32
    %c0_i32_0 = arith.constant 0 : i32
    %c0_i32_1 = arith.constant 0 : i32
    return %arg0, %c0_i32, %c0_i32_0 : i32, i32, i32
  }
  func.func @transform_6(%arg0: i32) -> (i32, i32, i32) {
    %c0_i32 = arith.constant 0 : i32
    %c0_i32_0 = arith.constant 0 : i32
    %c0_i32_1 = arith.constant 0 : i32
    return %arg0, %c0_i32, %c0_i32_0 : i32, i32, i32
  }
  func.func @transform_7(%arg0: i32) -> (i32, i32, i32) {
    %c0_i32 = arith.constant 0 : i32
    %c0_i32_0 = arith.constant 0 : i32
    %c0_i32_1 = arith.constant 0 : i32
    return %arg0, %c0_i32, %c0_i32_0 : i32, i32, i32
  }
  func.func @transform_8(%arg0: i32) -> (i32, i32, i32) {
    %c0_i32 = arith.constant 0 : i32
    %c0_i32_0 = arith.constant 0 : i32
    %c0_i32_1 = arith.constant 0 : i32
    return %arg0, %c0_i32, %c0_i32_0 : i32, i32, i32
  }
  func.func @transform_9(%arg0: i32) -> (i32, i32, i32, i32) {
    %c0_i32 = arith.constant 0 : i32
    %c0_i32_0 = arith.constant 0 : i32
    %c0_i32_1 = arith.constant 0 : i32
    %c0_i32_2 = arith.constant 0 : i32
    return %arg0, %c0_i32, %c0_i32_0, %c0_i32_1 : i32, i32, i32, i32
  }
  func.func @transform_10(%arg0: i32) -> (i32, i32, i32) {
    %c0_i32 = arith.constant 0 : i32
    %c0_i32_0 = arith.constant 0 : i32
    %c0_i32_1 = arith.constant 0 : i32
    return %arg0, %c0_i32, %c0_i32_0 : i32, i32, i32
  }
  func.func @transform_11(%arg0: i32) -> (i32, i32, i32, i32) {
    %c0_i32 = arith.constant 0 : i32
    %c0_i32_0 = arith.constant 0 : i32
    %c0_i32_1 = arith.constant 0 : i32
    %c0_i32_2 = arith.constant 0 : i32
    return %arg0, %c0_i32, %c0_i32_0, %c0_i32_1 : i32, i32, i32, i32
  }
  func.func @transform_12(%arg0: i32) -> (i32, i32, i32) {
    %c0_i32 = arith.constant 0 : i32
    %c0_i32_0 = arith.constant 0 : i32
    %c0_i32_1 = arith.constant 0 : i32
    return %arg0, %c0_i32, %c0_i32_0 : i32, i32, i32
  }
  func.func @transform_13(%arg0: i32) -> (i32, i32, i32) {
    %c0_i32 = arith.constant 0 : i32
    %c0_i32_0 = arith.constant 0 : i32
    %c0_i32_1 = arith.constant 0 : i32
    return %arg0, %c0_i32, %c0_i32_0 : i32, i32, i32
  }
  func.func @transform_14(%arg0: i32) -> (i32, i32, i32) {
    %c0_i32 = arith.constant 0 : i32
    %c0_i32_0 = arith.constant 0 : i32
    %c0_i32_1 = arith.constant 0 : i32
    return %arg0, %c0_i32, %c0_i32_0 : i32, i32, i32
  }
  func.func @transform_15(%arg0: i32) -> (i32, i32, i32) {
    %c0_i32 = arith.constant 0 : i32
    %c0_i32_0 = arith.constant 0 : i32
    %c0_i32_1 = arith.constant 0 : i32
    %c0_i32_2 = arith.constant 0 : i32
    return %c0_i32, %c0_i32_0, %c0_i32_1 : i32, i32, i32
  }
}

</mosaic_0001>

<bundles_post_ra>
// kernel: tpu_custom_call.1
= control target key start
LH: loop header
LB: loop body
LE: loop exit
PB: predicated region body
PF: predicated region fallthrough
CT: control target
= control target key end

     0   :  { %s4909_s0 = inlined_call_operand.hbm [shape: f32[2,8,40], index: 0, kind: input, shape index: {}]   ;;  %s4910_s1 = inlined_call_operand.hbm [shape: bf16[40,128], index: 1, kind: input, shape index: {}]   ;;  %s4911_s2 = inlined_call_operand.hbm [shape: f32[8,128], index: 2, kind: input, shape index: {}]   ;;  %s4912_s3 = inlined_call_operand.hbm [shape: bf16[2,128,768], index: 3, kind: input, shape index: {}]   ;;  %s4913_s4 = inlined_call_operand.vmem [shape: f32[2,1,768], index: 4, kind: input, shape index: {}]   ;;  %s4914_s5 = inlined_call_operand.hbm [shape: bf16[2,256,128], index: 5, kind: input, shape index: {}]   ;;  %s4915_s6 = inlined_call_operand.vmem [shape: f32[2,1,128], index: 6, kind: input, shape index: {}]   ;;  %s4916_s7 = inlined_call_operand.vmem [shape: f32[2,1,128], index: 7, kind: input, shape index: {}]   ;;  %s4917_s8 = inlined_call_operand.vmem [shape: f32[2,1,128], index: 8, kind: input, shape index: {}]   ;;  %s4918_s9 = inlined_call_operand.hbm [shape: bf16[2,3,128,128], index: 9, kind: input, shape index: {}]   ;;  %s4919_s10 = inlined_call_operand.vmem [shape: f32[2,1,128], index: 10, kind: input, shape index: {}]   ;;  %s4920_s11 = inlined_call_operand.hbm [shape: bf16[2,3,128,128], index: 11, kind: input, shape index: {}]   ;;  %s4921_s12 = inlined_call_operand.vmem [shape: f32[2,1,128], index: 12, kind: input, shape index: {}]   ;;  %s4922_s13 = inlined_call_operand.vmem [shape: f32[2,1,128], index: 13, kind: input, shape index: {}]   ;;  %s4923_s14 = inlined_call_operand.vmem [shape: f32[2,1,128], index: 14, kind: input, shape index: {}]   ;;  %s4924_s15 = inlined_call_operand.hbm [shape: f32[2,8,128], index: 15, kind: output, shape index: {}]  }
   0x1   :  { %4952 = sst [smem:[#allocation26_spill]] %s4909_s0 }
   0x2   :  { %4953 = sst [smem:[#allocation27_spill]] %s4910_s1 }
   0x3   :  { %4954 = sst [smem:[#allocation28_spill]] %s4912_s3 }
   0x4   :  { %4955 = sst [smem:[#allocation29_spill]] %s4913_s4 }
   0x5   :  { %4956 = sst [smem:[#allocation30_spill]] %s4915_s6 }
   0x6   :  { %4957 = sst [smem:[#allocation31_spill]] %s4916_s7 }
   0x7   :  { %4958 = sst [smem:[#allocation32_spill]] %s4917_s8 }
   0x8   :  { %4959 = sst [smem:[#allocation33_spill]] %s4918_s9 }
   0x9   :  { %4960 = sst [smem:[#allocation34_spill]] %s4919_s10 }
   0xa   :  { %4961 = sst [smem:[#allocation35_spill]] %s4921_s12 }
   0xb   :  { %4962 = sst [smem:[#allocation36_spill]] %s4922_s13 }
   0xc   :  { %4963 = sst [smem:[#allocation37_spill]] %s4923_s14 }
   0xd   :  { %4964 = sst [smem:[#allocation38_spill]] %s4924_s15 }
   0xe   :  { %20 = vsyncpa [#allocation3], 0 }
   0xf   :  { %21 = vsyncpa [#allocation6], 0 }
  0x10   :  { %22 = vsyncpa [#allocation9], 0 }
  0x11   :  { %24 = vsyncpa [#allocation9 + $0x1], 0 }
  0x12   :  { %25 = vsyncpa [#allocation12], 0 }
  0x13   :  { %27 = vsyncpa [#allocation12 + $0x1], 0 }
  0x14   :  { %28 = vsyncpa [#allocation4], 0  ;;  %s4132_s18 = smov 0   ;;  %s4134_s19 = smov 0  }
  0x15   :  { %s4136_s20 = smov 0   ;;  %s4138_s21 = smov 0  }
  0x16 LB: > { %4965 = sst [smem:[#allocation20_spill]] %s4021_s19  ;;  %s4151_s22 = sadd.s32 4294967295, %s4029_s21   ;;  %s4029_s21 = sphi %s4138_s21, %s5025_s21   ;;  %s4025_s20 = sphi %s4136_s20, %s5028_s20   ;;  %s4021_s19 = sphi %s4134_s19, %s5027_s19   ;;  %s4017_s18 = sphi %s4132_s18, %s5026_s18  }
  0x17   : > { %4966 = sst [smem:[#allocation21_spill]] %s4025_s20  ;;  %s4154_s23 = sadd.s32 1, %s4029_s21  }
  0x18   : > { %4967 = sst [smem:[#allocation22_spill]] %s4151_s22  ;;  %s101_s24 = ssub.s32 %s4029_s21, %s4154_s23 }
  0x19   : > { %4968 = sst [smem:[#allocation23_spill]] %s4154_s23  ;;  %s104_s25 = sadd.s32 1, %s4025_s20 }
  0x1a   : > { %p102_p0 = scmp.eq.s32.totalorder %s101_s24, 0  ;;  %p111_p1 = scmp.ne.s32.totalorder %s4025_s20, %s4021_s19 }
  0x1b   : > { %p112_p2 = scmp.eq.s32.totalorder %s4029_s21, 0  ;;  %p117_p3 = scmp.ne.s32.totalorder %s4021_s19, %s4017_s18 }
  0x1c   : > { %s4164_s26 = scalar_select %p102_p0, %s4025_s20, %s104_s25  }
  0x1d   : > { %p4166_p4 = por %p112_p2, %p111_p1  ;;  %p4929_p5 = scmp.eq.s32.totalorder %s4151_s22, 0 }
  0x1e   : > { %4969 = sst [smem:[#allocation24_spill]] %s4164_s26  ;;  %p2999_p6 = scmp.ge.s32.totalorder %s4029_s21, 1 }
  0x1f   : > { %s4970_s27 = scalar_select %p4166_p4, 1, 0 }
  0x20   : > { %p435_p7 = scmp.lt.s32.totalorder %s4029_s21, 3  ;;  %p4175_p8 = por %p4929_p5, %p117_p3 }
  0x21   : > { %s4031_s30 = smov [#allocation5]   ;;  %s4195_s24 = sand.u32 1, %s4025_s20  }
  0x22   : > { %s4971_s28 = scalar_select %p4175_p8, 1, 0 }
  0x23   : > { %p4180_p10 = pnand %p2999_p6, %p435_p7  ;;  %s460_s16 = sshll.u32 %s4031_s30, 4  ;;  %s461_s16 = int_to_ptr.vmem [resolvable:$true] %s460_s16 }
  0x24   : > { %4972 = sst [smem:[#allocation25_spill]] %s4971_s28  ;;  %s4975_s1 = sld [smem:[#allocation27_spill]] }
  0x25   : > { %s4973_s29 = scalar_select %p4180_p10, 1, 0 }
  0x26   : > { %p3505_p11 = pneg %p4180_p10 }
  0x28   : > { %p4188_p12 = pnand %p3505_p11, %p4929_p5 }
  0x2a   : > { %s4974_s17 = scalar_select %p4188_p12, 1, 0 }
  0x2b   : > { %s3749_s23 = scalar_lea.hbm %s4975_s1, 320  ;;  %p4205_p1 = pneg %p4188_p12 }
  0x2c   : > { %p3750_p0 = scmp.ne.s32.totalorder %s4975_s1, %s3749_s23  ;;  %p3756_p6 = scmp.lt.u32.totalorder %s3749_s23, %s4975_s1 }
  0x2d   : > { %s4976_s30 = scalar_select %p4205_p1, 1, 0 }
  0x2e   : > { %p3752_p2 = pnand %p4205_p1, %p3750_p0 }
  0x30   : > { %p3753_p3 = pneg %p3752_p2 }
  0x32   : > { %p3758_p7 = pnand %p3756_p6, %p3753_p3 }
  0x34   : > { %3761 = shalt.err (!%p3758_p7)
}
  0x35   : > { %s3762_s26 = scalar_lea.vmem %s461_s16, 320  ;;  %p3770_p13 = scmp.lt.s32.totalorder %s461_s16, %s461_s16 }
  0x36   : > { %p3763_p11 = scmp.ne.s32.totalorder %s461_s16, %s3762_s26  ;;  %p3771_p8 = scmp.lt.s32.totalorder %s3762_s26, %s3762_s26 }
  0x38   : > { %p3765_p9 = pnand %p3763_p11, %p4205_p1  ;;  %p3772_p10 = por %p3771_p8, %p3770_p13 }
  0x3a   : > { %p3766_p5 = pneg %p3765_p9 }
  0x3c   : > { %p3773_p4 = pnand %p3772_p10, %p3766_p5 }
  0x3e   : > { %3776 = shalt.err (!%p3773_p4)
}
  0x3f   : > { %s4932_s14 = smov 64   ;;  %s4934_s15 = smov 4  }
  0x40   : > { %3511 = dma.hbm_to_vmem [thread:$0]  (!%p4188_p12), %s4975_s1, 320, %s461_s16, [#allocation6], %s4932_s14, %s4932_s14, %s4934_s15  }
  0x41   : > { %s3472_s18 = smul.u32 384, %s4195_s24  ;;  %p4977_p8 = scmp.ne.s32.totalorder %s4970_s27, 0 }
  0x42   : > { %p4978_p5 = scmp.lt.s32.totalorder %s4029_s21, 2  ;;  %s3473_s26 = smul.u32 6144, %s4029_s21 }
  0x43   : > { %s4980_s3 = sld [smem:[#allocation28_spill]]  ;;  %s489_s20 = scalar_lea.vmem [#allocation8], %s3472_s18 }
  0x44   : > { %p4229_p4 = pnand %p4978_p5, %p4977_p8  ;;  %s496_s16 = sshll.u32 %s489_s20, 4  ;;  %s4239_s16 = int_to_ptr.vmem [resolvable:$true] %s496_s16 }
  0x45   : > { %s4981_s27 = sand.u32 1, %s4029_s21  }
  0x46   : > { %s4979_s25 = scalar_select %p4229_p4, 1, 0 }
  0x47   : > { %s4243_s23 = scalar_lea.sflag [#allocation9], %s4981_s27  ;;  %p4249_p10 = pneg %p4229_p4 }
  0x49   : > { %s4237_s10 = scalar_lea.hbm %s4980_s3, %s3473_s26  ;;  %s3782_s18 = scalar_lea.hbm %s4980_s3, 12288 }
  0x4a   : > { %s3777_s14 = scalar_lea.hbm %s4237_s10, 6144  ;;  %p3783_p2 = scmp.lt.u32.totalorder %s4237_s10, %s4980_s3 }
  0x4b   : > { %p3778_p9 = scmp.ne.s32.totalorder %s4237_s10, %s3777_s14  ;;  %p3784_p3 = scmp.lt.u32.totalorder %s3782_s18, %s3777_s14 }
  0x4c   : > { %s4982_s15 = scalar_select %p4249_p10, 1, 0 }
  0x4d   : > { %p3780_p13 = pnand %p4249_p10, %p3778_p9  ;;  %p3785_p6 = por %p3784_p3, %p3783_p2 }
  0x4e   : > { %p3786_p7 = scmp.lt.u32.totalorder %s3777_s14, %s4237_s10 }
  0x4f   : > { %p3781_p0 = pneg %p3780_p13 }
  0x50   : > { %p3787_p11 = por %p3786_p7, %p3785_p6 }
  0x52   : > { %p3788_p8 = pnand %p3787_p11, %p3781_p0 }
  0x54   : > { %3791 = shalt.err (!%p3788_p8)
}
  0x55   : > { %s3792_s27 = scalar_lea.vmem %s4239_s16, 6144  ;;  %s4034_s12 = smov [#allocation8]  }
  0x56   : > { %p3793_p5 = scmp.ne.s32.totalorder %s4239_s16, %s3792_s27  ;;  %s3797_s13 = sshll.u32 %s4034_s12, 4  ;;  %s3798_s13 = int_to_ptr.vmem [resolvable:$false] %s3797_s13 }
  0x57   : > { %s3799_s26 = scalar_lea.vmem %s3798_s13, 12288  ;;  %p3800_p12 = scmp.lt.s32.totalorder %s4239_s16, %s3798_s13 }
  0x58   : > { %p3795_p9 = pnand %p3793_p5, %p4249_p10  ;;  %p3801_p1 = scmp.lt.s32.totalorder %s3799_s26, %s3792_s27 }
  0x5a   : > { %p3796_p13 = pneg %p3795_p9  ;;  %p3802_p2 = por %p3801_p1, %p3800_p12 }
  0x5c   : > { %p3803_p3 = pnand %p3802_p2, %p3796_p13 }
  0x5e   : > { %3806 = shalt.err (!%p3803_p3)
}
  0x5f   : > { %s4035_s14 = smov 384   ;;  %s4036_s18 = smov 24  }
  0x60   : > { %3518 = dma.hbm_to_vmem [thread:$0]  (!%p4229_p4), %s4237_s10, 6144, %s4239_s16, %s4243_s23, %s4035_s14, %s4035_s14, %s4036_s18  }
  0x61   : > { %s4941_s20 = smul.u32 192, %s4195_s24  ;;  %s4037_s27 = smov [#allocation2]  }
  0x62   : > { %s4940_s12 = smul.u32 3072, %s4029_s21  ;;  %s447_s13 = sshll.u32 %s4037_s27, 4  ;;  %s4286_s13 = int_to_ptr.vmem [resolvable:$true] %s447_s13 }
  0x63   : > { %s4983_s9 = sld [smem:[#allocation33_spill]]  ;;  %s556_s4 = scalar_lea.vmem [#allocation11], %s4941_s20 }
  0x64   : > { %s563_s8 = sshll.u32 %s556_s4, 4  ;;  %s4984_s10 = sand.u32 1, %s4029_s21   ;;  %s4284_s8 = int_to_ptr.vmem [resolvable:$true] %s563_s8 }
  0x65   : > { %s4290_s16 = scalar_lea.sflag [#allocation12], %s4984_s10 }
  0x69   : > { %s4280_s3 = scalar_lea.hbm %s4983_s9, %s4940_s12  ;;  %s3812_s27 = scalar_lea.hbm %s4983_s9, 6144 }
  0x6a   : > { %s3807_s14 = scalar_lea.hbm %s4280_s3, 3072  ;;  %p3813_p6 = scmp.lt.u32.totalorder %s4280_s3, %s4983_s9 }
  0x6b   : > { %p3808_p12 = scmp.ne.s32.totalorder %s4280_s3, %s3807_s14  ;;  %p3814_p7 = scmp.lt.u32.totalorder %s3812_s27, %s3807_s14 }
  0x6c   : > { %p3816_p8 = scmp.lt.u32.totalorder %s3807_s14, %s4280_s3 }
  0x6d   : > { %p3810_p1 = pnand %p3808_p12, %p4249_p10  ;;  %p3815_p11 = por %p3814_p7, %p3813_p6 }
  0x6f   : > { %p3811_p0 = pneg %p3810_p1  ;;  %p3817_p5 = por %p3816_p8, %p3815_p11 }
  0x71   : > { %p3818_p9 = pnand %p3817_p5, %p3811_p0 }
  0x73   : > { %3821 = shalt.err (!%p3818_p9)
}
  0x74   : > { %s3822_s4 = scalar_lea.vmem %s4284_s8, 3072  ;;  %s4038_s10 = smov [#allocation11]  }
  0x75   : > { %p3823_p13 = scmp.ne.s32.totalorder %s4284_s8, %s3822_s4  ;;  %s3827_s1 = sshll.u32 %s4038_s10, 4  ;;  %s3828_s1 = int_to_ptr.vmem [resolvable:$false] %s3827_s1 }
  0x76   : > { %s3829_s12 = scalar_lea.vmem %s3828_s1, 6144  ;;  %p3830_p12 = scmp.lt.s32.totalorder %s4284_s8, %s3828_s1 }
  0x77   : > { %p3825_p2 = pnand %p3823_p13, %p4249_p10  ;;  %p3831_p1 = scmp.lt.s32.totalorder %s3829_s12, %s3822_s4 }
  0x79   : > { %p3826_p3 = pneg %p3825_p2  ;;  %p3832_p6 = por %p3831_p1, %p3830_p12 }
  0x7b   : > { %p3833_p7 = pnand %p3832_p6, %p3826_p3 }
  0x7d   : > { %3836 = shalt.err (!%p3833_p7)
}
  0x7e   : > { %s4985_s14 = smov 4   ;;  %s4986_s18 = smov 64  }
  0x7f   : > { %3524 = dma.hbm_to_vmem [thread:$0]  (!%p4229_p4), %s4280_s3, 3072, %s4284_s8, %s4290_s16, %s4986_s18, %s4986_s18, %s4985_s14  }
  0x80   : > { %s4987_s0 = sld [smem:[#allocation26_spill]]  ;;  %p4988_p11 = scmp.ne.s32.totalorder %s4976_s30, 0 }
  0x86   : > { %s3837_s10 = scalar_lea.hbm %s4987_s0, 256 }
  0x87   : > { %p3838_p0 = scmp.ne.s32.totalorder %s4987_s0, %s3837_s10  ;;  %p3844_p9 = scmp.lt.u32.totalorder %s3837_s10, %s4987_s0 }
  0x89   : > { %p3840_p8 = pnand %p3838_p0, %p4988_p11 }
  0x8b   : > { %p3841_p5 = pneg %p3840_p8 }
  0x8d   : > { %p3846_p13 = pnand %p3844_p9, %p3841_p5 }
  0x8f   : > { %3849 = shalt.err (!%p3846_p13)
}
  0x90   : > { %s3850_s3 = scalar_lea.vmem %s4286_s13, 256  ;;  %p3858_p1 = scmp.lt.s32.totalorder %s4286_s13, %s4286_s13 }
  0x91   : > { %p3851_p2 = scmp.ne.s32.totalorder %s4286_s13, %s3850_s3  ;;  %p3859_p6 = scmp.lt.s32.totalorder %s3850_s3, %s3850_s3 }
  0x93   : > { %p3853_p3 = pnand %p3851_p2, %p4988_p11  ;;  %p3860_p7 = por %p3859_p6, %p3858_p1 }
  0x95   : > { %p3854_p12 = pneg %p3853_p3 }
  0x97   : > { %p3861_p0 = pnand %p3860_p7, %p3854_p12 }
  0x99   : > { %3864 = shalt.err (!%p3861_p0)
}
  0x9a   : > { %s4039_s8 = smov 128   ;;  %s4040_s20 = smov 8  }
  0x9b   : > { %p4989_p8 = scmp.ne.s32.totalorder %s4974_s17, 0  ;;  %s3005_s10 = sshll.u32 %s4195_s24, 7 }
  0x9c   : > { %s4041_s1 = smov [#allocation7]   ;;  %s3151_s12 = sshll.u32 %s4029_s21, 11 }
  0x9d   : > { %3508 = dma.hbm_to_vmem [thread:$0]  (!%p4989_p8), %s4987_s0, 256, %s4286_s13, [#allocation3], %s4039_s8, %s4039_s8, %s4040_s20  }
  0x9e   : > { %s474_s4 = sshll.u32 %s4041_s1, 4  ;;  %s3865_s7 = scalar_lea.hbm %s4911_s2, 128  ;;  %s475_s4 = int_to_ptr.vmem [resolvable:$true] %s474_s4 }
  0x9f   : > { %p3866_p5 = scmp.ne.s32.totalorder %s4911_s2, %s3865_s7  ;;  %p3872_p2 = scmp.lt.u32.totalorder %s3865_s7, %s4911_s2 }
  0xa1   : > { %p3868_p9 = pnand %p3866_p5, %p4988_p11 }
  0xa3   : > { %p3869_p13 = pneg %p3868_p9 }
  0xa5   : > { %p3874_p3 = pnand %p3872_p2, %p3869_p13 }
  0xa7   : > { %3877 = shalt.err (!%p3874_p3)
}
  0xa8   : > { %s3878_s13 = scalar_lea.vmem %s475_s4, 128  ;;  %p3886_p7 = scmp.lt.s32.totalorder %s475_s4, %s475_s4 }
  0xa9   : > { %p3879_p12 = scmp.ne.s32.totalorder %s475_s4, %s3878_s13  ;;  %p3887_p0 = scmp.lt.s32.totalorder %s3878_s13, %s3878_s13 }
  0xab   : > { %p3881_p1 = pnand %p3879_p12, %p4988_p11  ;;  %p3888_p4 = por %p3887_p0, %p3886_p7 }
  0xad   : > { %p3882_p6 = pneg %p3881_p1 }
  0xaf   : > { %p3889_p10 = pnand %p3888_p4, %p3882_p6 }
  0xb1   : > { %3892 = shalt.err (!%p3889_p10)
}
  0xb2   : > { %3514 = dma.hbm_to_vmem [thread:$0]  (!%p4989_p8), %s4911_s2, 128, %s475_s4, [#allocation6]  }
  0xb3   : > { %s4363_s22 = scalar_lea.hbm %s4914_s5, %s3151_s12  ;;  %s517_s28 = scalar_lea.vmem [#allocation10], %s3005_s10 }
  0xb4   : > { %s524_s30 = sshll.u32 %s517_s28, 4  ;;  %s3893_s8 = scalar_lea.hbm %s4363_s22, 2048  ;;  %s4365_s30 = int_to_ptr.vmem [resolvable:$true] %s524_s30 }
  0xb5   : > { %p3894_p4 = scmp.ne.s32.totalorder %s4363_s22, %s3893_s8  ;;  %p4990_p10 = scmp.ne.s32.totalorder %s4982_s15, 0 }
  0xb6   : > { %s3898_s27 = scalar_lea.hbm %s4914_s5, 4096  ;;  %p3899_p8 = scmp.lt.u32.totalorder %s4363_s22, %s4914_s5 }
  0xb7   : > { %p3896_p11 = pnand %p3894_p4, %p4990_p10  ;;  %p3900_p9 = scmp.lt.u32.totalorder %s3898_s27, %s3893_s8 }
  0xb8   : > { %p3902_p2 = scmp.lt.u32.totalorder %s3893_s8, %s4363_s22 }
  0xb9   : > { %p3897_p5 = pneg %p3896_p11  ;;  %p3901_p13 = por %p3900_p9, %p3899_p8 }
  0xbb   : > { %p3903_p3 = por %p3902_p2, %p3901_p13 }
  0xbd   : > { %p3904_p12 = pnand %p3903_p3, %p3897_p5 }
  0xbf   : > { %3907 = shalt.err (!%p3904_p12)
}
  0xc0   : > { %s3908_s10 = scalar_lea.vmem %s4365_s30, 2048  ;;  %s4042_s4 = smov [#allocation10]  }
  0xc1   : > { %p3909_p1 = scmp.ne.s32.totalorder %s4365_s30, %s3908_s10  ;;  %s3913_s12 = sshll.u32 %s4042_s4, 4  ;;  %s3914_s12 = int_to_ptr.vmem [resolvable:$false] %s3913_s12 }
  0xc2   : > { %s3915_s3 = scalar_lea.vmem %s3914_s12, 4096  ;;  %p3916_p0 = scmp.lt.s32.totalorder %s4365_s30, %s3914_s12 }
  0xc3   : > { %p3911_p6 = pnand %p3909_p1, %p4990_p10  ;;  %p3917_p4 = scmp.lt.s32.totalorder %s3915_s3, %s3908_s10 }
  0xc5   : > { %p3912_p7 = pneg %p3911_p6  ;;  %p3918_p11 = por %p3917_p4, %p3916_p0 }
  0xc7   : > { %p3919_p8 = pnand %p3918_p11, %p3912_p7 }
  0xc9   : > { %3922 = shalt.err (!%p3919_p8)
}
  0xca   : > { %p4991_p5 = scmp.ne.s32.totalorder %s4979_s25, 0  ;;  %s4992_s13 = smul.u32 3072, %s4029_s21 }
  0xcb   : > { %s4993_s19 = smul.u32 192, %s4195_s24 }
  0xcc   : > { %3521 = dma.hbm_to_vmem [thread:$0]  (!%p4991_p5), %s4363_s22, 2048, %s4365_s30, %s4243_s23, %s4986_s18, %s4986_s18, %s4985_s14  }
  0xcd   : > { %s4397_s7 = scalar_lea.hbm %s4920_s11, %s4992_s13  ;;  %s583_s28 = scalar_lea.vmem [#allocation13], %s4993_s19 }
  0xce   : > { %s590_s8 = sshll.u32 %s583_s28, 4  ;;  %s3923_s17 = scalar_lea.hbm %s4397_s7, 3072  ;;  %s4401_s8 = int_to_ptr.vmem [resolvable:$true] %s590_s8 }
  0xcf   : > { %p3924_p9 = scmp.ne.s32.totalorder %s4397_s7, %s3923_s17  ;;  %s3928_s22 = scalar_lea.hbm %s4920_s11, 6144 }
  0xd0   : > { %p3929_p3 = scmp.lt.u32.totalorder %s4397_s7, %s4920_s11  ;;  %p3930_p12 = scmp.lt.u32.totalorder %s3928_s22, %s3923_s17 }
  0xd1   : > { %p3926_p13 = pnand %p3924_p9, %p4990_p10  ;;  %p3932_p6 = scmp.lt.u32.totalorder %s3923_s17, %s4397_s7 }
  0xd2   : > { %p3931_p1 = por %p3930_p12, %p3929_p3 }
  0xd3   : > { %p3927_p2 = pneg %p3926_p13 }
  0xd4   : > { %p3933_p7 = por %p3932_p6, %p3931_p1 }
  0xd6   : > { %p3934_p0 = pnand %p3933_p7, %p3927_p2 }
  0xd8   : > { %3937 = shalt.err (!%p3934_p0)
}
  0xd9   : > { %s3938_s24 = scalar_lea.vmem %s4401_s8, 3072  ;;  %s4043_s27 = smov [#allocation13]  }
  0xda   : > { %p3939_p4 = scmp.ne.s32.totalorder %s4401_s8, %s3938_s24  ;;  %s3943_s26 = sshll.u32 %s4043_s27, 4  ;;  %s3944_s26 = int_to_ptr.vmem [resolvable:$false] %s3943_s26 }
  0xdb   : > { %s3945_s1 = scalar_lea.vmem %s3944_s26, 6144  ;;  %p3946_p9 = scmp.lt.s32.totalorder %s4401_s8, %s3944_s26 }
  0xdc   : > { %p3941_p11 = pnand %p3939_p4, %p4990_p10  ;;  %p3947_p13 = scmp.lt.s32.totalorder %s3945_s1, %s3938_s24 }
  0xde   : > { %p3942_p8 = pneg %p3941_p11  ;;  %p3948_p3 = por %p3947_p13, %p3946_p9 }
  0xe0   : > { %p3949_p12 = pnand %p3948_p3, %p3942_p8 }
  0xe2   : > { %3952 = shalt.err (!%p3949_p12)
}
  0xe3   : > { %3527 = dma.hbm_to_vmem [thread:$0]  (!%p4991_p5), %s4397_s7, 3072, %s4401_s8, %s4290_s16, %s4986_s18, %s4986_s18, %s4985_s14  }
  0xe4   : > { %p4994_p10 = scmp.ne.s32.totalorder %s4973_s29, 0 }
  0xe5   : > { %s4995_s15 = sld [smem:[#allocation22_spill]] (!%p4994_p10) }
  0xe6   : > { %620 = sbr.rel (%p4994_p10) target bundleno = 3195 (0xc7b), region = 80 }
  0xeb   : > { %p4996_p2 = scmp.eq.s32.totalorder (!%p4994_p10), %s4995_s15, 0 }
  0xed   : > { %3996 = dma.done.wait (%p4996_p2), [#allocation3], 256   ;;  %p4997_p1 = pmov %p4996_p2 }
  0xef   : > { %3998 = vsyncadd (%p4997_p1), [#allocation3], 4294967040  ;;  %p4998_p6 = pmov %p4997_p1 }
  0xf0   : > { %p4999_p7 = pmov %p4997_p1 }
  0xf1   : > { %4000 = dma.done.wait (%p4998_p6), [#allocation6], 448  }
  0xf2   : > { %4002 = vsyncadd (%p4999_p7), [#allocation6], 4294966848  ;;  %s5000_s25 = sld [smem:[#allocation20_spill]]  ;;  %s5001_s10 = sld [smem:[#allocation25_spill]] }
  0xf3   : > { %s634_s4 = sand.u32 1, %s4995_s15  }
  0xf4   : > { %s635_s29 = scalar_lea.sflag [#allocation9], %s634_s4 }
  0xf8   : > { %s636_s16 = sand.u32 1, %s5000_s25   ;;  %p5002_p5 = scmp.ne.s32.totalorder %s5001_s10, 0 }
  0xf9   : > { %s3478_s14 = smul.u32 384, %s636_s16 }
  0xfb   : > { %s4440_s18 = scalar_lea.vmem [#allocation8], %s3478_s14 }
  0xfc   : > { %4004 = dma.done.wait (%p5002_p5), %s635_s29, 8192  }
  0xfd   : > { %4006 = vsyncadd (%p5002_p5), %s635_s29, 4294959104  ;;  %s3014_s12 = sshll.u32 %s636_s16, 7  ;;  %s3479_s3 = smul.u32 192, %s636_s16 }
  0xfe   : > { %s4446_s13 = scalar_lea.vmem [#allocation10], %s3014_s12  ;;  %s653_s6 = scalar_lea.sflag [#allocation12], %s634_s4 }
  0xff   : > { %s4448_s9 = scalar_lea.vmem [#allocation11], %s3479_s3 }
 0x100   : > { %4008 = dma.done.wait (%p5002_p5), %s653_s6, 6144  }
 0x101   : > { %4010 = vsyncadd (%p5002_p5), %s653_s6, 4294961152  ;;  %p747_p0 = scmp.lt.s32.totalorder %s4995_s15, 1  ;;  %s5006_s4 = sld [smem:[#allocation29_spill]] }
 0x102   : > { %s5007_s12 = sld [smem:[#allocation34_spill]]  ;;  %s5008_s8 = sld [smem:[#allocation35_spill]] }
 0x103   : > { %s4456_s7 = scalar_select %p747_p0, %s4995_s15, 1 }
 0x104   : > { %s5009_s22 = sld [smem:[#allocation36_spill]]  ;;  %s5010_s27 = sld [smem:[#allocation37_spill]] }
 0x105   : > { %s3480_s19 = smul.u32 6, %s4456_s7  ;;  %s4492_s1 = scalar_lea.vmem [#allocation13], %s3479_s3 }
 0x106   : > { %p5011_p4 = scmp.ne.s32.totalorder %s4995_s15, 0 }
 0x107   : > { %s4474_s16 = scalar_lea.vmem %s5006_s4, %s3480_s19  ;;  %v3586_v0 = vld [vmem:[#allocation5] sm:$0xff] (!%p5011_p4)   ;;  %v4044_v1 = vmov (!%p5011_p4), 0.0   ;;  %v3587_v2 = vld [vmem:[#allocation5 + $0x8] sm:$0xff] (!%p5011_p4)   ;;  %v3588_v3 = vld [vmem:[#allocation5 + $0x10] ss:$0 sps:$4 sm:$0xff] (!%p5011_p4)   ;;  %vm4045_vm0 = vmmov (!%p5011_p4), 0  }
 0x108   : > { %s762_s6 = scalar_lea.vmem %s5007_s12, %s4456_s7  ;;  %s765_s17 = scalar_lea.vmem %s5008_s8, %s4456_s7  ;;  %3244 = vmatprep.subr.bf16.mxu0 (!%p5011_p4), %v4044_v1  ;;  %3250 = vmatprep.mubr.msk.bf16.mxu0 (!%p5011_p4), %vm4045_vm0, %v4044_v1  ;;  %vm804_vm1 = vcmask (!%p5011_p4), 1043456   ;;  %v777_v4 = vld [vmem:[#allocation2] sm:$0xff] (!%p5011_p4)  ;;  %v778_v5 = vld [vmem:[#allocation2 + $0x8] sm:$0xff] (!%p5011_p4)  ;;  %vm800_vm2 = vcmask (!%p5011_p4), 326656  }
 0x109   : > { %776 = sbr.rel (%p5011_p4) target bundleno = 493 (0x1ed), region = 112  ;;  %3245 = vmatpush3.bf16.msra.mxu0 (!%p5011_p4), %v3586_v0  ;;  %v806_v6 = vsel (!%p5011_p4), %vm804_vm1, %v3588_v3, 0  ;;  %v779_v7 = vpack.c.bf16 (!%p5011_p4), %v778_v5, %v777_v4  ;;  %v849_v8 = vld [vmem:[#allocation7] sm:$0xff] (!%p5011_p4) }
 0x10a   : > { %s768_s30 = scalar_lea.vmem %s5009_s22, %s4456_s7  ;;  %s771_s26 = scalar_lea.vmem %s5010_s27, %s4456_s7  ;;  %3246 = vmatprep.subr.bf16.mxu0 (!%p5011_p4), %v4044_v1 }
 0x10d   : > { %3247 = vmatpush3.bf16.msra.mxu0 (!%p5011_p4), %v3587_v2 }
 0x10e   : > { %3248 = vmatprep.subr.bf16.mxu0 (!%p5011_p4), %v4044_v1 }
 0x111   : > { %3249 = vmatpush3.bf16.msra.mxu0 %v806_v6 }
 0x114   : > { %3251 = vmatmul.mubr.msk.bf16.vlgmr.msra.gmra.mrb[0].mxu0 %vm800_vm2, %v779_v7 }
 0x1e7   : > { %v842_v9 = vpop.f32.mrb[0].mxu0 }
 0x1e8   : > { %v850_v10 = vadd.f32 %v849_v8, %v842_v9  ;;  %v3252_v11 = vpop.f32.mrb[1].mxu0 }
 0x1e9   : > { %v845_v12 = vpop.f32.mrb[2].mxu0 }
 0x1ea   : > { %852 = vst [vmem:[#allocation14] sm:$0xff] %v850_v10  ;;  %v851_v13 = vadd.f32 %v849_v8, %v845_v12  ;;  %v3253_v14 = vpop.f32.mrb[3].mxu0 }
 0x1ec   : > { %853 = vst [vmem:[#allocation14 + $0x8] sm:$0xff] %v851_v13 }
 0x1ed PF: > { %v3589_v15 = vld [vmem:[%s4440_s18 + $0xc] ss:$24 sps:$4 sm:$0xff]   ;;  %v3591_v16 = vld [vmem:[%s4440_s18 + $0x8] ss:$24 sps:$4 sm:$0xff]   ;;  %v4046_v17 = vmov 0   ;;  %v4047_v3 = vmov 0.0   ;;  %v1042_v4 = vlaneseq }
 0x1ee   : > { %1387 = vmatprep.mubr.bf16.mxu1 %v4046_v17  ;;  %1344 = vmatprep.mubr.bf16.mxu0 %v4046_v17  ;;  %v3592_v18 = vld [vmem:[%s4440_s18 + $0x4] ss:$24 sps:$4 sm:$0xff]   ;;  %v3596_v20 = vld [vmem:[%s4440_s18] ss:$24 sps:$4 sm:$0xff]   ;;  %v3598_v22 = vld [vmem:[%s4440_s18 + $0x34] ss:$24 sps:$4 sm:$0xff]  }
 0x1ef   : > { %1355 = vmatprep.subr.bf16.mxu1 %v3589_v15  ;;  %v3594_v19 = vld [vmem:[%s4440_s18 + $0x3c] ss:$24 sps:$4 sm:$0xff]   ;;  %v3597_v21 = vld [vmem:[%s4440_s18 + $0x38] ss:$24 sps:$4 sm:$0xff]   ;;  %1312 = vmatprep.subr.bf16.mxu0 %v3592_v18  ;;  %v3600_v23 = vld [vmem:[%s4440_s18 + $0x6c] ss:$24 sps:$4 sm:$0xff]  }
 0x1f0   : > { %1356 = vmatpush1.bf16.msra.mxu1 %v3591_v16  ;;  %1313 = vmatpush1.bf16.msra.mxu0 %v3596_v20  ;;  %v3602_v24 = vld [vmem:[%s4440_s18 + $0x30] ss:$24 sps:$4 sm:$0xff]   ;;  %v3604_v26 = vld [vmem:[%s4440_s18 + $0x64] ss:$24 sps:$4 sm:$0xff]   ;;  %v3608_v28 = vld [vmem:[%s4440_s18 + $0x60] ss:$24 sps:$4 sm:$0xff]  }
 0x1f1   : > { %1357 = vmatprep.subr.bf16.mxu1 %v3594_v19  ;;  %1314 = vmatprep.subr.bf16.mxu0 %v3598_v22  ;;  %v3603_v25 = vld [vmem:[%s4440_s18 + $0x68] ss:$24 sps:$4 sm:$0xff]   ;;  %v3606_v27 = vld [vmem:[%s4440_s18 + $0x9c] ss:$24 sps:$4 sm:$0xff]   ;;  %v3609_v30 = vld [vmem:[%s4440_s18 + $0x98] ss:$24 sps:$4 sm:$0xff]  }
 0x1f2   : > { %v3610_v29 = vld [vmem:[%s4440_s18 + $0x94] ss:$24 sps:$4 sm:$0xff]   ;;  %v3614_v32 = vld [vmem:[%s4440_s18 + $0x90] ss:$24 sps:$4 sm:$0xff]   ;;  %v3616_v33 = vld [vmem:[%s4440_s18 + $0xc4] ss:$24 sps:$4 sm:$0xff]  }
 0x1f3   : > { %v3612_v31 = vld [vmem:[%s4440_s18 + $0xcc] ss:$24 sps:$4 sm:$0xff]   ;;  %v3615_v34 = vld [vmem:[%s4440_s18 + $0xc8] ss:$24 sps:$4 sm:$0xff]   ;;  %v3618_v35 = vld [vmem:[%s4440_s18 + $0xfc] ss:$24 sps:$4 sm:$0xff]  }
 0x1f4   : > { %1358 = vmatpush1.bf16.msra.mxu1 %v3597_v21  ;;  %1315 = vmatpush1.bf16.msra.mxu0 %v3602_v24  ;;  %v3620_v36 = vld [vmem:[%s4440_s18 + $0xc0] ss:$24 sps:$4 sm:$0xff]   ;;  %v3622_v37 = vld [vmem:[%s4440_s18 + $0xf4] ss:$24 sps:$4 sm:$0xff]   ;;  %v3626_v40 = vld [vmem:[%s4440_s18 + $0xf0] ss:$24 sps:$4 sm:$0xff]  }
 0x1f5   : > { %1359 = vmatprep.subr.bf16.mxu1 %v3600_v23  ;;  %1316 = vmatprep.subr.bf16.mxu0 %v3604_v26  ;;  %v3621_v38 = vld [vmem:[%s4440_s18 + $0xf8] ss:$24 sps:$4 sm:$0xff]   ;;  %v3624_v39 = vld [vmem:[%s4440_s18 + $0x12c] ss:$24 sps:$4 sm:$0xff]   ;;  %v3627_v42 = vld [vmem:[%s4440_s18 + $0x128] ss:$24 sps:$4 sm:$0xff]  }
 0x1f6   : > { %v3628_v41 = vld [vmem:[%s4440_s18 + $0x124] ss:$24 sps:$4 sm:$0xff]   ;;  %v3632_v44 = vld [vmem:[%s4440_s18 + $0x120] ss:$24 sps:$4 sm:$0xff]   ;;  %v3634_v46 = vld [vmem:[%s4440_s18 + $0x154] ss:$24 sps:$4 sm:$0xff]  }
 0x1f7   : > { %v3630_v43 = vld [vmem:[%s4440_s18 + $0x15c] ss:$24 sps:$4 sm:$0xff]   ;;  %v3633_v45 = vld [vmem:[%s4440_s18 + $0x158] ss:$24 sps:$4 sm:$0xff]   ;;  %v4529_v47 = vld [vmem:[#allocation14] sm:$0xff]  ;;  %vm4048_vm3 = vmmov 0  }
 0x1f8   : > { %1360 = vmatpush1.bf16.msra.mxu1 %v3603_v25  ;;  %1317 = vmatpush1.bf16.msra.mxu0 %v3608_v28  ;;  %v4531_v48 = vld [vmem:[#allocation14 + $0x8] sm:$0xff]  ;;  %v3642_v53 = vld [vmem:[%s4440_s18 + $0x44] ss:$24 sps:$4 sm:$0xff]   ;;  %v3640_v54 = vld [vmem:[%s4440_s18 + $0x40] ss:$24 sps:$4 sm:$0xff]   ;;  %v4559_v5 = vshrl.u32 %v1042_v4, 7 }
 0x1f9   : > { %1361 = vmatprep.subr.bf16.mxu1 %v3606_v27  ;;  %1318 = vmatprep.subr.bf16.mxu0 %v3610_v29  ;;  %v3636_v49 = vld [vmem:[%s4440_s18 + $0x150] ss:$24 sps:$4 sm:$0xff]   ;;  %v1040_v50 = vpack.c.bf16 %v4531_v48, %v4529_v47  ;;  %v3639_v51 = vld [vmem:[%s4440_s18 + $0x14] ss:$24 sps:$4 sm:$0xff]   ;;  %v3648_v57 = vld [vmem:[%s4440_s18 + $0xa4] ss:$24 sps:$4 sm:$0xff]  }
 0x1fa   : > { %v3637_v52 = vld [vmem:[%s4440_s18 + $0x10] ss:$24 sps:$4 sm:$0xff]   ;;  %v3645_v55 = vld [vmem:[%s4440_s18 + $0x74] ss:$24 sps:$4 sm:$0xff]   ;;  %v3646_v58 = vld [vmem:[%s4440_s18 + $0xa0] ss:$24 sps:$4 sm:$0xff]  }
 0x1fb   : > { %v3643_v56 = vld [vmem:[%s4440_s18 + $0x70] ss:$24 sps:$4 sm:$0xff]   ;;  %v3651_v59 = vld [vmem:[%s4440_s18 + $0xd4] ss:$24 sps:$4 sm:$0xff]   ;;  %v3654_v61 = vld [vmem:[%s4440_s18 + $0x104] ss:$24 sps:$4 sm:$0xff]  }
 0x1fc   : > { %1362 = vmatpush1.bf16.msra.mxu1 %v3609_v30  ;;  %1319 = vmatpush1.bf16.msra.mxu0 %v3614_v32  ;;  %v3649_v60 = vld [vmem:[%s4440_s18 + $0xd0] ss:$24 sps:$4 sm:$0xff]   ;;  %v3652_v62 = vld [vmem:[%s4440_s18 + $0x100] ss:$24 sps:$4 sm:$0xff]   ;;  %v3657_v63 = vld [vmem:[%s4440_s18 + $0x134] ss:$24 sps:$4 sm:$0xff]  }
 0x1fd   : > { %1363 = vmatprep.subr.bf16.mxu1 %v3612_v31  ;;  %1320 = vmatprep.subr.bf16.mxu0 %v3616_v33  ;;  %v3655_v0 = vld [vmem:[%s4440_s18 + $0x130] ss:$24 sps:$4 sm:$0xff]   ;;  %v3660_v1 = vld [vmem:[%s4440_s18 + $0x164] ss:$24 sps:$4 sm:$0xff]   ;;  %v3658_v2 = vld [vmem:[%s4440_s18 + $0x160] ss:$24 sps:$4 sm:$0xff]  }
 0x1fe   : > { %v1052_v6 = vsub.s32 2, %v4559_v5  ;;  %v904_v7 = vld [vmem:[%s4474_s16] sm:$0x3f]  ;;  %v1056_v8 = vsub.s32 3, %v4559_v5  ;;  %v1044_v9 = vsub.s32 0, %v4559_v5  ;;  %v1048_v11 = vsub.s32 1, %v4559_v5 }
 0x1ff   : > { %vm1555_vm4 = vcmask 1043456   ;;  %vm1525_vm5 = vcmask 64512   ;;  %s5012_s18 = sld [smem:[#allocation30_spill]]  ;;  %s5014_s21 = sld [smem:[#allocation31_spill]]  ;;  %vm2115_vm8 = vcmp.lt.s32.totalorder %v4559_v5, 1  ;;  %vm2318_vm9 = vcmp.lt.s32.totalorder %v4559_v5, 7 }
 0x200   : > { %1364 = vmatpush1.bf16.msra.mxu1 %v3615_v34  ;;  %1321 = vmatpush1.bf16.msra.mxu0 %v3620_v36  ;;  %v1053_v10 = vrot.slane %v904_v7, %v1052_v6  ;;  %v1057_v12 = vrot.slane %v904_v7, %v1056_v8  ;;  %v1045_v14 = vrot.slane %v904_v7, %v1044_v9  ;;  %s5016_s4 = sld [smem:[#allocation32_spill]]  ;;  %s4049_s0 = smov [#allocation14]  }
 0x201   : > { %1365 = vmatprep.subr.bf16.mxu1 %v3618_v35  ;;  %1322 = vmatprep.subr.bf16.mxu0 %v3622_v37  ;;  %v1060_v37 = vsub.s32 4, %v4559_v5  ;;  %s2776_s15 = sshll.u32 %s4049_s0, 4  ;;  %s2777_s15 = int_to_ptr.vmem [resolvable:$true] %s2776_s15 }
 0x202   : > { %p3960_p3 = scmp.lt.s32.totalorder %s2777_s15, %s2777_s15 }
 0x204   : > { %1366 = vmatpush1.bf16.msra.mxu1 %v3621_v38  ;;  %1323 = vmatpush1.bf16.msra.mxu0 %v3626_v40  ;;  %v1064_v38 = vsub.s32 5, %v4559_v5 }
 0x205   : > { %1367 = vmatprep.subr.bf16.mxu1 %v3624_v39  ;;  %1324 = vmatprep.subr.bf16.mxu0 %v3628_v41  ;;  %v1061_v39 = vrot.slane %v904_v7, %v1060_v37  ;;  %s5013_s3 = scalar_lea.vmem %s5012_s18, %s4456_s7  ;;  %s5015_s20 = scalar_lea.vmem %s5014_s21, %s4456_s7 }
 0x206   : > { %v1065_v40 = vrot.slane %v904_v7, %v1064_v38  ;;  %s5017_s16 = scalar_lea.vmem %s5016_s4, %s4456_s7 }
 0x208   : > { %1368 = vmatpush1.bf16.msra.mxu1 %v3627_v42  ;;  %1325 = vmatpush1.bf16.msra.mxu0 %v3632_v44 }
 0x209   : > { %1369 = vmatprep.subr.bf16.mxu1 %v3630_v43  ;;  %1326 = vmatprep.subr.bf16.mxu0 %v3634_v46 }
 0x20c   : > { %1370 = vmatpush1.bf16.msra.mxu1 %v3633_v45  ;;  %1327 = vmatpush1.bf16.msra.mxu0 %v3636_v49 }
 0x20d   : > { %1398 = vmatprep.subr.bf16.mxu0 %v3639_v51  ;;  %3254 = vmatprep.subr.bf16.mxu1 %v4047_v3 }
 0x20f   : > { %1388 = vmatmul.mubr.bf16.vlgmr.msra.gmra.mrb[0].mxu1 %v1040_v50  ;;  %1345 = vmatmul.mubr.bf16.vlgmr.msra.gmra.mrb[0].mxu0 %v1040_v50 }
 0x210   : > { %1399 = vmatpush1.bf16.msra.mxu0 %v3637_v52  ;;  %1430 = vmatprep.mubr.bf16.mxu0 %v4046_v17  ;;  %v1049_v17 = vrot.slane %v904_v7, %v1048_v11 }
 0x211   : > { %1400 = vmatprep.subr.bf16.mxu0 %v3642_v53  ;;  %3256 = vmatprep.mubr.msk.bf16.mxu1 %vm4048_vm3, %v4047_v3 }
 0x214   : > { %1401 = vmatpush1.bf16.msra.mxu0 %v3640_v54 }
 0x215   : > { %1402 = vmatprep.subr.bf16.mxu0 %v3645_v55 }
 0x218   : > { %1403 = vmatpush1.bf16.msra.mxu0 %v3643_v56 }
 0x219   : > { %1404 = vmatprep.subr.bf16.mxu0 %v3648_v57 }
 0x21c   : > { %1405 = vmatpush1.bf16.msra.mxu0 %v3646_v58 }
 0x21d   : > { %1406 = vmatprep.subr.bf16.mxu0 %v3651_v59 }
 0x220   : > { %1407 = vmatpush1.bf16.msra.mxu0 %v3649_v60 }
 0x221   : > { %1408 = vmatprep.subr.bf16.mxu0 %v3654_v61 }
 0x224   : > { %1409 = vmatpush1.bf16.msra.mxu0 %v3652_v62 }
 0x225   : > { %1410 = vmatprep.subr.bf16.mxu0 %v3657_v63 }
 0x228   : > { %1411 = vmatpush1.bf16.msra.mxu0 %v3655_v0 }
 0x229   : > { %1412 = vmatprep.subr.bf16.mxu0 %v3660_v1 }
 0x22c   : > { %1413 = vmatpush1.bf16.msra.mxu0 %v3658_v2 }
 0x22d   : > { %3278 = vmatprep.subr.bf16.mxu0 %v4047_v3 }
 0x22f   : > { %1431 = vmatmul.mubr.bf16.vlgmr.msra.gmra.mrb[4].mxu0 %v1040_v50 }
 0x230   : > { %3280 = vmatprep.mubr.msk.bf16.mxu0 %vm4048_vm3, %v4047_v3 }
 0x2e2   : > { %v1389_v13 = vpop.f32.mrb[0].mxu1  ;;  %v1346_v20 = vpop.f32.mrb[0].mxu0 }
 0x2e3   : > { %v1390_v15 = vadd.f32 %v1389_v13, %v1053_v10  ;;  %v1391_v16 = vpop.f32.mrb[1].mxu1  ;;  %v1348_v23 = vpop.f32.mrb[1].mxu0  ;;  %v1347_v26 = vadd.f32 %v1346_v20, %v1045_v14 }
 0x2e4   : > { %v1392_v18 = vadd.f32 %v1391_v16, %v1057_v12  ;;  %v1393_v19 = vpop.f32.mrb[2].mxu1  ;;  %v1350_v27 = vpop.f32.mrb[2].mxu0  ;;  %v1349_v28 = vadd.f32 %v1348_v23, %v1049_v17 }
 0x2e5   : > { %v1443_v21 = vpack.c.bf16 %v1390_v15, %v1390_v15  ;;  %v1395_v22 = vpop.f32.mrb[3].mxu1  ;;  %v1352_v29 = vpop.f32.mrb[3].mxu0  ;;  %v1394_v31 = vadd.f32 %v1393_v19, %v1053_v10  ;;  %v1441_v32 = vpack.c.bf16 %v1347_v26, %v1347_v26  ;;  %v1351_v35 = vadd.f32 %v1350_v27, %v1045_v14 }
 0x2e6   : > { %v1648_v24 = vpack.c.bf16 %v1392_v18, %v1392_v18  ;;  %v4566_v25 = vadd.f32 %v1395_v22, %v1057_v12  ;;  %v4568_v30 = vadd.f32 %v1352_v29, %v1049_v17  ;;  %v1646_v33 = vpack.c.bf16 %v1349_v28, %v1349_v28 }
 0x2e7   : > { %3255 = vmatpush3.bf16.xpose.msra.mxu1 %v1443_v21  ;;  %v1444_v34 = vpack.c.bf16 %v1394_v31, %v1394_v31  ;;  %v1442_v36 = vpack.c.bf16 %v1351_v35, %v1351_v35 }
 0x2e8   : > { %3279 = vmatpush3.bf16.xpose.msra.mxu0 %v1648_v24  ;;  %3260 = vmatprep.subr.bf16.mxu1 %v4047_v3 }
 0x2e9   : > { %3290 = vmatprep.subr.bf16.mxu0 %v4047_v3 }
 0x2ee   : > { %3257 = vmatmul.mubr.bf16.vlgmr.msra.gmra.mrb[4].mxu1 %v1441_v32 }
 0x2ef   : > { %3261 = vmatpush3.bf16.xpose.msra.mxu1 %v1444_v34  ;;  %3281 = vmatmul.mubr.bf16.vlgmr.msra.gmra.mrb[8].mxu0 %v1646_v33 }
 0x2f0   : > { %3262 = vmatprep.mubr.msk.bf16.mxu1 %vm4048_vm3, %v4047_v3  ;;  %3266 = vmatprep.subr.bf16.mxu1 %v4047_v3 }
 0x2f1   : > { %3292 = vmatprep.mubr.msk.bf16.mxu0 %vm4048_vm3, %v4047_v3 }
 0x2f6   : > { %3263 = vmatmul.mubr.bf16.vlgmr.msra.gmra.mrb[8].mxu1 %v1442_v36 }
 0x2f7   : > { %3268 = vmatprep.mubr.msk.bf16.mxu1 %vm4048_vm3, %v4047_v3 }
 0x302   : > { %v1432_v41 = vpop.f32.mrb[4].mxu0 }
 0x303   : > { %v1433_v42 = vadd.f32 %v1432_v41, %v1061_v39  ;;  %v1434_v43 = vpop.f32.mrb[5].mxu0 }
 0x304   : > { %v1435_v44 = vadd.f32 %v1434_v43, %v1065_v40  ;;  %v1436_v45 = vpop.f32.mrb[6].mxu0 }
 0x305   : > { %v1550_v46 = vpack.c.bf16 %v1433_v42, %v1433_v42  ;;  %v1437_v49 = vadd.f32 %v1436_v45, %v1061_v39  ;;  %v1438_v50 = vpop.f32.mrb[7].mxu0  ;;  %v1649_v39 = vpack.c.bf16 %v4566_v25, %v4566_v25  ;;  %v1647_v42 = vpack.c.bf16 %v4568_v30, %v4568_v30 }
 0x306   : > { %v1754_v51 = vpack.c.bf16 %v1435_v44, %v1435_v44  ;;  %v1439_v52 = vadd.f32 %v1438_v50, %v1065_v40 }
 0x307   : > { %v1557_v53 = vsel %vm1555_vm4, %v1550_v46, 0  ;;  %v1551_v54 = vpack.c.bf16 %v1437_v49, %v1437_v49 }
 0x308   : > { %v1760_v55 = vsel %vm1555_vm4, %v1754_v51, 0  ;;  %v1755_v56 = vpack.c.bf16 %v1439_v52, %v1439_v52  ;;  %3267 = vmatpush3.bf16.msra.mxu1 %v1557_v53 }
 0x309   : > { %v1603_v57 = vsel %vm1555_vm4, %v1551_v54, 0  ;;  %3291 = vmatpush3.bf16.msra.mxu0 %v1760_v55  ;;  %3272 = vmatprep.subr.bf16.mxu1 %v4047_v3 }
 0x30a   : > { %v4586_v58 = vsel %vm1555_vm4, %v1755_v56, 0  ;;  %3302 = vmatprep.subr.bf16.mxu0 %v4047_v3 }
 0x3c1   : > { %v1479_v59 = vpop.f32.mrb[4].mxu1 }
 0x3c2   : > { %v3258_v60 = vpop.f32.mrb[5].mxu1  ;;  %v1684_v61 = vpop.f32.mrb[8].mxu0  ;;  %v1526_v62 = vsel %vm1525_vm5, %v1479_v59, -inf }
 0x3c3   : > { %v3282_v63 = vpop.f32.mrb[9].mxu0  ;;  %1527 = vmax.xlane.f32.xlu0 %v1526_v62  ;;  %v1482_v0 = vpop.f32.mrb[6].mxu1  ;;  %v1730_v11 = vsel %vm1525_vm5, %v1684_v61, -inf }
 0x3c4   : > { %v3259_v1 = vpop.f32.mrb[7].mxu1  ;;  %v1687_v2 = vpop.f32.mrb[10].mxu0 }
 0x3c5   : > { %v3283_v4 = vpop.f32.mrb[11].mxu0  ;;  %v3669_v2 = vld [vmem:[%s4446_s13 + $0x40] sm:$0xff]  }
 0x3c6   : > { %v3670_v4 = vld [vmem:[%s4446_s13 + $0x48] sm:$0xff]  }
 0x3c9   : > { %v1519_v6 = vpop.f32.mrb[8].mxu1 }
 0x3ca   : > { %v3264_v7 = vpop.f32.mrb[9].mxu1  ;;  %v1529_v8 = vsel %vm1525_vm5, %v1519_v6, -inf }
 0x3cb   : > { %1530 = vmax.xlane.f32.xlu0 %v1529_v8  ;;  %v1522_v9 = vpop.f32.mrb[10].mxu1  ;;  %v3672_v7 = vld [vmem:[%s4446_s13 + $0x58] sm:$0xff]   ;;  %v3673_v8 = vld [vmem:[%s4446_s13 + $0x60] sm:$0xff]  }
 0x3cc   : > { %v3265_v10 = vpop.f32.mrb[11].mxu1  ;;  %v3674_v9 = vld [vmem:[%s4446_s13 + $0x68] sm:$0xff]  }
 0x3cd   : > { %v3675_v10 = vld [vmem:[%s4446_s13 + $0x70] sm:$0xff]  }
 0x3cf   : > { %1731 = vmax.xlane.f32.xlu0 %v1730_v11 }
 0x450   : > { %v1528_v12 = vpop.xlane.xlu0 %1527 }
 0x451   : > { %v1532_v13 = vsub.f32 %v1479_v59, %v1528_v12 }
 0x453   : > { %v1534_v14 = vmul.f32 1.442695, %v1532_v13 }
 0x455   : > { %3725 = vpow2.f32 %v1534_v14  ;;  %v3661_v14 = vld [vmem:[%s4446_s13] sm:$0xff]  }
 0x458   : > { %v1531_v15 = vpop.xlane.xlu0 %1530 }
 0x459   : > { %v1533_v16 = vsub.f32 %v1519_v6, %v1531_v15  ;;  %v3671_v6 = vld [vmem:[%s4446_s13 + $0x50] sm:$0xff]  }
 0x45b   : > { %v1536_v17 = vmul.f32 1.442695, %v1533_v16  ;;  %v3662_v16 = vld [vmem:[%s4446_s13 + $0x8] sm:$0xff]  }
 0x45c   : > { %v1732_v18 = vpop.xlane.xlu0 %1731 }
 0x45d   : > { %3727 = vpow2.f32 %v1536_v17  ;;  %v1736_v19 = vsub.f32 %v1684_v61, %v1732_v18  ;;  %v3663_v17 = vld [vmem:[%s4446_s13 + $0x10] sm:$0xff]   ;;  %v3664_v18 = vld [vmem:[%s4446_s13 + $0x18] sm:$0xff]  }
 0x45f   : > { %v3726_v20 = vpop.eup %3725  ;;  %v1738_v21 = vmul.f32 1.442695, %v1736_v19  ;;  %v3665_v19 = vld [vmem:[%s4446_s13 + $0x20] sm:$0xff]  }
 0x460   : > { %v1538_v22 = vsel %vm1525_vm5, %v3726_v20, 0.0 }
 0x461   : > { %3729 = vpow2.f32 %v1738_v21  ;;  %1539 = vadd.xlane.f32.xlu1 %v1538_v22  ;;  %v3667_v21 = vld [vmem:[%s4446_s13 + $0x30] sm:$0xff]   ;;  %v3668_v22 = vld [vmem:[%s4446_s13 + $0x38] sm:$0xff]  }
 0x467   : > { %v3728_v23 = vpop.eup %3727 }
 0x468   : > { %v1541_v24 = vsel %vm1525_vm5, %v3728_v23, 0.0 }
 0x469   : > { %1542 = vadd.xlane.f32.xlu1 %v1541_v24 }
 0x46b   : > { %v3730_v26 = vpop.eup %3729 }
 0x46c   : > { %v1742_v27 = vsel %vm1525_vm5, %v3730_v26, 0.0 }
 0x46d   : > { %1743 = vadd.xlane.f32.xlu0 %v1742_v27 }
 0x4ee   : > { %v1540_v28 = vpop.xlane.xlu1 %1539 }
 0x4ef   : > { %3731 = vrcp.f32 %v1540_v28 }
 0x4f6   : > { %v1543_v29 = vpop.xlane.xlu1 %1542 }
 0x4f7   : > { %3733 = vrcp.f32 %v1543_v29 }
 0x4f9   : > { %v3732_v31 = vpop.eup %3731 }
 0x4fa   : > { %v1546_v32 = vmul.f32 %v3732_v31, %v3726_v20  ;;  %v1744_v33 = vpop.xlane.xlu0 %1743  ;;  %v3666_v20 = vld [vmem:[%s4446_s13 + $0x28] sm:$0xff]  }
 0x4fb   : > { %3735 = vrcp.f32 %v1744_v33 }
 0x4fc   : > { %v1548_v34 = vpack.c.bf16 %v1546_v32, %v1546_v32 }
 0x4fe   : > { %3269 = vmatmul.mubr.msk.bf16.vlgmr.msra.gmra.mrb[12].mxu1 %vm1525_vm5, %v1548_v34 }
 0x4ff   : > { %3273 = vmatpush3.bf16.msra.mxu1 %v1603_v57  ;;  %3274 = vmatprep.mubr.msk.bf16.mxu1 %vm4048_vm3, %v4047_v3 }
 0x500   : > { %3284 = vmatprep.subr.bf16.mxu1 %v4047_v3 }
 0x501   : > { %v3734_v35 = vpop.eup %3733 }
 0x502   : > { %v1547_v36 = vmul.f32 %v3734_v35, %v3728_v23  ;;  %v3676_v23 = vld [vmem:[%s4446_s13 + $0x78] sm:$0xff]   ;;  %v3088_v35 = vld [vmem:[%s5013_s3] ss:$0 sm:$0xff] }
 0x504   : > { %v1549_v37 = vpack.c.bf16 %v1547_v36, %v1547_v36 }
 0x505   : > { %v3736_v38 = vpop.eup %3735 }
 0x506   : > { %v1750_v40 = vmul.f32 %v3736_v38, %v3730_v26  ;;  %3275 = vmatmul.mubr.msk.bf16.vlgmr.msra.gmra.mrb[16].mxu1 %vm1525_vm5, %v1549_v37 }
 0x507   : > { %3286 = vmatprep.mubr.msk.bf16.mxu1 %vm4048_vm3, %v4047_v3 }
 0x508   : > { %3285 = vmatpush3.bf16.xpose.msra.mxu1 %v1649_v39  ;;  %v1752_v41 = vpack.c.bf16 %v1750_v40, %v1750_v40 }
 0x509   : > { %3296 = vmatprep.subr.bf16.mxu1 %v4047_v3 }
 0x50a   : > { %3293 = vmatmul.mubr.msk.bf16.vlgmr.msra.gmra.mrb[12].mxu0 %vm1525_vm5, %v1752_v41 }
 0x50b   : > { %3318 = vmatprep.mubr.msk.bf16.mxu0 %vm4048_vm3, %v4047_v3  ;;  %3303 = vmatpush3.bf16.msra.mxu0 %v3669_v2 }
 0x50c   : > { %3304 = vmatprep.subr.bf16.mxu0 %v4047_v3 }
 0x50f   : > { %3287 = vmatmul.mubr.bf16.vlgmr.msra.gmra.mrb[20].mxu1 %v1647_v42  ;;  %3305 = vmatpush3.bf16.msra.mxu0 %v3670_v4 }
 0x510   : > { %3297 = vmatpush3.bf16.msra.mxu1 %v4586_v58  ;;  %3298 = vmatprep.mubr.msk.bf16.mxu1 %vm4048_vm3, %v4047_v3 }
 0x511   : > { %3322 = vmatprep.subr.bf16.mxu1 %v4047_v3  ;;  %3306 = vmatprep.subr.bf16.mxu0 %v4047_v3 }
 0x513   : > { %3307 = vmatpush3.bf16.msra.mxu0 %v3671_v6 }
 0x514   : > { %3308 = vmatprep.subr.bf16.mxu0 %v4047_v3 }
 0x517   : > { %3309 = vmatpush3.bf16.msra.mxu0 %v3672_v7 }
 0x518   : > { %3310 = vmatprep.subr.bf16.mxu0 %v4047_v3 }
 0x51b   : > { %3311 = vmatpush3.bf16.msra.mxu0 %v3673_v8 }
 0x51c   : > { %3312 = vmatprep.subr.bf16.mxu0 %v4047_v3 }
 0x51f   : > { %3313 = vmatpush3.bf16.msra.mxu0 %v3674_v9 }
 0x520   : > { %3314 = vmatprep.subr.bf16.mxu0 %v4047_v3 }
 0x523   : > { %3315 = vmatpush3.bf16.msra.mxu0 %v3675_v10 }
 0x524   : > { %3316 = vmatprep.subr.bf16.mxu0 %v4047_v3 }
 0x527   : > { %3317 = vmatpush3.bf16.msra.mxu0 %v3676_v23 }
 0x528   : > { %3342 = vmatprep.subr.bf16.mxu0 %v4047_v3 }
 0x5d1   : > { %v4614_v25 = vpop.f32.mrb[12].mxu1 }
 0x5d2   : > { %v3270_v43 = vpop.f32.mrb[13].mxu1 }
 0x5d3   : > { %v1596_v44 = vpop.f32.mrb[14].mxu1 }
 0x5d4   : > { %v3271_v45 = vpop.f32.mrb[15].mxu1 }
 0x5d9   : > { %v4616_v46 = vpop.f32.mrb[16].mxu1 }
 0x5da   : > { %v1645_v49 = vpack.c.bf16 %v4616_v46, %v4614_v25  ;;  %v3276_v50 = vpop.f32.mrb[17].mxu1 }
 0x5db   : > { %v1642_v30 = vpop.f32.mrb[18].mxu1  ;;  %v3680_v50 = vld [vmem:[%s4448_s9 + $0x18] sm:$0xff]  }
 0x5dc   : > { %v3277_v51 = vpop.f32.mrb[19].mxu1  ;;  %v3681_v30 = vld [vmem:[%s4448_s9 + $0x20] sm:$0xff]  }
 0x5dd   : > { %v4620_v52 = vpop.f32.mrb[12].mxu0  ;;  %v3682_v51 = vld [vmem:[%s4448_s9 + $0x28] sm:$0xff]  }
 0x5de   : > { %v3294_v53 = vpop.f32.mrb[13].mxu0 }
 0x5df   : > { %v1799_v54 = vpop.f32.mrb[14].mxu0  ;;  %v3684_v53 = vld [vmem:[%s4448_s9 + $0x38] sm:$0xff]  }
 0x5e0   : > { %v3295_v55 = vpop.f32.mrb[15].mxu0  ;;  %v3701_v54 = vld [vmem:[%s4492_s1] sm:$0xff]  }
 0x5e1   : > { %v3702_v55 = vld [vmem:[%s4492_s1 + $0x8] sm:$0xff]  }
 0x5e2   : > { %v1724_v56 = vpop.f32.mrb[20].mxu1 }
 0x5e3   : > { %v3288_v57 = vpop.f32.mrb[21].mxu1  ;;  %v1733_v58 = vsel %vm1525_vm5, %v1724_v56, -inf }
 0x5e4   : > { %1734 = vmax.xlane.f32.xlu1 %v1733_v58  ;;  %v1727_v59 = vpop.f32.mrb[22].mxu1  ;;  %v3704_v57 = vld [vmem:[%s4492_s1 + $0x18] sm:$0xff]   ;;  %v3705_v58 = vld [vmem:[%s4492_s1 + $0x20] sm:$0xff]  }
 0x5e5   : > { %v3289_v60 = vpop.f32.mrb[23].mxu1 }
 0x671   : > { %v1735_v61 = vpop.xlane.xlu1 %1734 }
 0x672   : > { %v1737_v62 = vsub.f32 %v1724_v56, %v1735_v61  ;;  %v3703_v56 = vld [vmem:[%s4492_s1 + $0x10] sm:$0xff]  }
 0x674   : > { %v1740_v63 = vmul.f32 1.442695, %v1737_v62 }
 0x676   : > { %3737 = vpow2.f32 %v1740_v63 }
 0x680   : > { %v3738_v0 = vpop.eup %3737 }
 0x681   : > { %v1745_v1 = vsel %vm1525_vm5, %v3738_v0, 0.0 }
 0x682   : > { %1746 = vadd.xlane.f32.xlu1 %v1745_v1 }
 0x70f   : > { %v1747_v11 = vpop.xlane.xlu1 %1746 }
 0x710   : > { %3739 = vrcp.f32 %v1747_v11  ;;  %v4711_v11 = vadd.s32 8, %v4559_v5 }
 0x71a   : > { %v3740_v12 = vpop.eup %3739 }
 0x71b   : > { %v1751_v13 = vmul.f32 %v3740_v12, %v3738_v0  ;;  %v2086_v12 = vand.u32 7, %v4559_v5  ;;  %v3711_v5 = vld [vmem:[%s4492_s1 + $0x50] sm:$0xff]  }
 0x71d   : > { %v1753_v15 = vpack.c.bf16 %v1751_v13, %v1751_v13  ;;  %v2093_v13 = vand.u32 7, %v4711_v11 }
 0x71f   : > { %3299 = vmatmul.mubr.msk.bf16.vlgmr.msra.gmra.mrb[24].mxu1 %vm1525_vm5, %v1753_v15 }
 0x720   : > { %3323 = vmatpush3.bf16.msra.mxu1 %v3661_v14  ;;  %3338 = vmatprep.mubr.msk.bf16.mxu1 %vm4048_vm3, %v4047_v3 }
 0x721   : > { %3324 = vmatprep.subr.bf16.mxu1 %v4047_v3 }
 0x724   : > { %3325 = vmatpush3.bf16.msra.mxu1 %v3662_v16  ;;  %v3089_v16 = vld [vmem:[%s5015_s20] ss:$0 sm:$0xff] }
 0x725   : > { %3326 = vmatprep.subr.bf16.mxu1 %v4047_v3 }
 0x728   : > { %3327 = vmatpush3.bf16.msra.mxu1 %v3663_v17 }
 0x729   : > { %3328 = vmatprep.subr.bf16.mxu1 %v4047_v3 }
 0x72c   : > { %3329 = vmatpush3.bf16.msra.mxu1 %v3664_v18 }
 0x72d   : > { %3330 = vmatprep.subr.bf16.mxu1 %v4047_v3 }
 0x730   : > { %3331 = vmatpush3.bf16.msra.mxu1 %v3665_v19 }
 0x731   : > { %3332 = vmatprep.subr.bf16.mxu1 %v4047_v3 }
 0x734   : > { %3333 = vmatpush3.bf16.msra.mxu1 %v3666_v20  ;;  %v3090_v20 = vld [vmem:[%s5017_s16] ss:$0 sm:$0xff] }
 0x735   : > { %3334 = vmatprep.subr.bf16.mxu1 %v4047_v3 }
 0x738   : > { %3335 = vmatpush3.bf16.msra.mxu1 %v3667_v21  ;;  %v2118_v21 = vadd.s32 4294967295, %v2086_v12 }
 0x739   : > { %3336 = vmatprep.subr.bf16.mxu1 %v4047_v3 }
 0x73a   : > { %vm2120_vm6 = vcmp.ge.s32.totalorder %v2118_v21, 0 }
 0x73c   : > { %3337 = vmatpush3.bf16.msra.mxu1 %v3668_v22  ;;  %v2119_v22 = vadd.s32 4294967295, %v2093_v13 }
 0x73d   : > { %3402 = vmatprep.subr.bf16.mxu1 %v4047_v3 }
 0x73e   : > { %vm2121_vm7 = vcmp.ge.s32.totalorder %v2119_v22, 0 }
 0x73f   : > { %3339 = vmatmul.mubr.bf16.vlgmr.msra.gmra.mrb[28].mxu1 %v1645_v49  ;;  %v3678_v49 = vld [vmem:[%s4448_s9 + $0x8] sm:$0xff]  }
 0x740   : > { %3418 = vmatprep.mubr.msk.bf16.mxu1 %vm4048_vm3, %v4047_v3  ;;  %3403 = vmatpush3.bf16.msra.mxu1 %v3701_v54 }
 0x741   : > { %3404 = vmatprep.subr.bf16.mxu1 %v4047_v3 }
 0x744   : > { %3405 = vmatpush3.bf16.msra.mxu1 %v3702_v55  ;;  %v3699_v55 = vld [vmem:[%s4448_s9 + $0xb0] sm:$0xff]  }
 0x745   : > { %3406 = vmatprep.subr.bf16.mxu1 %v4047_v3 }
 0x748   : > { %3407 = vmatpush3.bf16.msra.mxu1 %v3703_v56 }
 0x749   : > { %3408 = vmatprep.subr.bf16.mxu1 %v4047_v3 }
 0x74c   : > { %3409 = vmatpush3.bf16.msra.mxu1 %v3704_v57 }
 0x74d   : > { %3410 = vmatprep.subr.bf16.mxu1 %v4047_v3 }
 0x750   : > { %3411 = vmatpush3.bf16.msra.mxu1 %v3705_v58 }
 0x751   : > { %3412 = vmatprep.subr.bf16.mxu1 %v4047_v3 }
 0x7f2   : > { %v1842_v24 = vpop.f32.mrb[24].mxu1 }
 0x7f3   : > { %v1848_v26 = vpack.c.bf16 %v1842_v24, %v4620_v52  ;;  %v3300_v27 = vpop.f32.mrb[25].mxu1  ;;  %v3683_v52 = vld [vmem:[%s4448_s9 + $0x30] sm:$0xff]  }
 0x7f4   : > { %v1845_v28 = vpop.f32.mrb[26].mxu1 }
 0x7f5   : > { %v3301_v29 = vpop.f32.mrb[27].mxu1  ;;  %3319 = vmatmul.mubr.bf16.vlgmr.msra.gmra.mrb[16].mxu0 %v1848_v26 }
 0x7f6   : > { %3358 = vmatprep.mubr.msk.bf16.mxu0 %vm4048_vm3, %v4047_v3 }
 0x812   : > { %v2020_v31 = vpop.f32.mrb[28].mxu1 }
 0x813   : > { %v3340_v32 = vpop.f32.mrb[29].mxu1 }
 0x814   : > { %v2023_v33 = vpop.f32.mrb[30].mxu1  ;;  %v4739_v32 = vsel %vm2120_vm6, 1.0, %v4047_v3 }
 0x815   : > { %v3341_v34 = vpop.f32.mrb[31].mxu1 }
 0x8c8   : > { %v1931_v36 = vpop.f32.mrb[16].mxu0 }
 0x8c9   : > { %v2021_v37 = vadd.f32 %v2020_v31, %v1931_v36  ;;  %v3320_v38 = vpop.f32.mrb[17].mxu0 }
 0x8ca   : > { %v1934_v39 = vpop.f32.mrb[18].mxu0  ;;  %v3685_v38 = vld [vmem:[%s4448_s9 + $0x40] sm:$0xff]  }
 0x8cb   : > { %v2033_v40 = vadd.f32 %v3088_v35, %v2021_v37  ;;  %v2024_v41 = vadd.f32 %v2023_v33, %v1934_v39  ;;  %v3321_v42 = vpop.f32.mrb[19].mxu0  ;;  %v4742_v33 = vsel %vm2121_vm7, 1.0, %v4047_v3 }
 0x8cc   : > { %v3688_v42 = vld [vmem:[%s4448_s9 + $0x58] sm:$0xff]  }
 0x8cd   : > { %v2034_v25 = vadd.f32 %v3088_v35, %v2024_v41  ;;  %v4673_v43 = vadd.f32 %v2033_v40, %v4529_v47  ;;  %v3677_v47 = vld [vmem:[%s4448_s9] sm:$0xff]   ;;  %v3686_v40 = vld [vmem:[%s4448_s9 + $0x48] sm:$0xff]   ;;  %v3687_v41 = vld [vmem:[%s4448_s9 + $0x50] sm:$0xff]  }
 0x8ce   : > { %3343 = vmatpush3.bf16.msra.mxu0 %v3677_v47 }
 0x8cf   : > { %2037 = vadd.xlane.f32.xlu0 %v4673_v43  ;;  %v4677_v44 = vadd.f32 %v2034_v25, %v4531_v48  ;;  %v2043_v45 = vmul.f32 %v4673_v43, %v4673_v43  ;;  %3344 = vmatprep.subr.bf16.mxu0 %v4047_v3  ;;  %v3679_v48 = vld [vmem:[%s4448_s9 + $0x10] sm:$0xff]   ;;  %v3689_v25 = vld [vmem:[%s4448_s9 + $0x60] sm:$0xff]  }
 0x8d1   : > { %2039 = vadd.xlane.f32.xlu1 %v4677_v44  ;;  %v2044_v46 = vmul.f32 %v4677_v44, %v4677_v44 }
 0x8d2   : > { %3345 = vmatpush3.bf16.msra.mxu0 %v3678_v49  ;;  %v3694_v49 = vld [vmem:[%s4448_s9 + $0x88] sm:$0xff]  }
 0x8d3   : > { %2045 = vadd.xlane.f32.xlu0 %v2043_v45  ;;  %3346 = vmatprep.subr.bf16.mxu0 %v4047_v3  ;;  %v3692_v45 = vld [vmem:[%s4448_s9 + $0x78] sm:$0xff]  }
 0x8d5   : > { %2047 = vadd.xlane.f32.xlu1 %v2044_v46  ;;  %v3693_v46 = vld [vmem:[%s4448_s9 + $0x80] sm:$0xff]  }
 0x8d6   : > { %3347 = vmatpush3.bf16.msra.mxu0 %v3679_v48  ;;  %v3695_v48 = vld [vmem:[%s4448_s9 + $0x90] sm:$0xff]  }
 0x8d7   : > { %3348 = vmatprep.subr.bf16.mxu0 %v4047_v3 }
 0x8da   : > { %3349 = vmatpush3.bf16.msra.mxu0 %v3680_v50  ;;  %v3696_v50 = vld [vmem:[%s4448_s9 + $0x98] sm:$0xff]  }
 0x8db   : > { %3350 = vmatprep.subr.bf16.mxu0 %v4047_v3 }
 0x8de   : > { %3351 = vmatpush3.bf16.msra.mxu0 %v3681_v30  ;;  %v3697_v30 = vld [vmem:[%s4448_s9 + $0xa0] sm:$0xff]  }
 0x8df   : > { %3352 = vmatprep.subr.bf16.mxu0 %v4047_v3 }
 0x8e2   : > { %3353 = vmatpush3.bf16.msra.mxu0 %v3682_v51  ;;  %v2321_v51 = vadd.s32 1, %v2086_v12 }
 0x8e3   : > { %3354 = vmatprep.subr.bf16.mxu0 %v4047_v3 }
 0x8e4   : > { %vm2325_vm10 = vcmp.lt.s32.totalorder %v2321_v51, 8  ;;  %v3120_v51 = vld [vmem:[%s765_s17] ss:$0 sm:$0xff] }
 0x8e6   : > { %3355 = vmatpush3.bf16.msra.mxu0 %v3683_v52  ;;  %v2322_v52 = vadd.s32 1, %v2093_v13 }
 0x8e7   : > { %3356 = vmatprep.subr.bf16.mxu0 %v4047_v3 }
 0x8e8   : > { %vm2326_vm11 = vcmp.lt.s32.totalorder %v2322_v52, 8 }
 0x8ea   : > { %3357 = vmatpush3.bf16.msra.mxu0 %v3684_v53  ;;  %v3698_v53 = vld [vmem:[%s4448_s9 + $0xa8] sm:$0xff]  }
 0x8eb   : > { %3362 = vmatprep.subr.bf16.mxu0 %v4047_v3 }
 0x95c   : > { %v2038_v59 = vpop.xlane.xlu0 %2037 }
 0x95d   : > { %v2041_v60 = vmul.f32 0.03125, %v2038_v59  ;;  %v3110_v59 = vsel %vm2325_vm10, 1.0, %v4047_v3 }
 0x95e   : > { %v2040_v61 = vpop.xlane.xlu1 %2039 }
 0x95f   : > { %v2042_v62 = vmul.f32 0.03125, %v2040_v61  ;;  %v2051_v0 = vmul.f32 %v2041_v60, %v2041_v60  ;;  %v2055_v14 = vsub.f32 %v4673_v43, %v2041_v60  ;;  %v3690_v43 = vld [vmem:[%s4448_s9 + $0x68] sm:$0xff]   ;;  %v3111_v60 = vsel %vm2326_vm11, 1.0, %v4047_v3  ;;  %v3700_v61 = vld [vmem:[%s4448_s9 + $0xb8] sm:$0xff]  }
 0x960   : > { %v2046_v63 = vpop.xlane.xlu0 %2045 }
 0x961   : > { %v2049_v1 = vmul.f32 0.03125, %v2046_v63  ;;  %v2052_v4 = vmul.f32 %v2042_v62, %v2042_v62  ;;  %v2056_v17 = vsub.f32 %v4677_v44, %v2042_v62  ;;  %v3691_v44 = vld [vmem:[%s4448_s9 + $0x70] sm:$0xff]  }
 0x962   : > { %v2048_v2 = vpop.xlane.xlu1 %2047 }
 0x963   : > { %v2053_v6 = vsub.f32 %v2049_v1, %v2051_v0  ;;  %v2050_v7 = vmul.f32 0.03125, %v2048_v2  ;;  %v3706_v1 = vld [vmem:[%s4492_s1 + $0x28] sm:$0xff]   ;;  %v3707_v2 = vld [vmem:[%s4492_s1 + $0x30] sm:$0xff]  }
 0x964   : > { %3413 = vmatpush3.bf16.msra.mxu1 %v3706_v1 }
 0x965   : > { %v2057_v8 = vadd.f32 1e-05, %v2053_v6  ;;  %v2054_v9 = vsub.f32 %v2050_v7, %v2052_v4  ;;  %3414 = vmatprep.subr.bf16.mxu1 %v4047_v3  ;;  %v3708_v4 = vld [vmem:[%s4492_s1 + $0x38] sm:$0xff]   ;;  %v3091_v6 = vld [vmem:[%s762_s6] ss:$0 sm:$0xff] }
 0x967   : > { %3741 = vrsqrt.f32 %v2057_v8  ;;  %v2058_v10 = vadd.f32 1e-05, %v2054_v9 }
 0x968   : > { %3415 = vmatpush3.bf16.msra.mxu1 %v3707_v2 }
 0x969   : > { %3743 = vrsqrt.f32 %v2058_v10  ;;  %3416 = vmatprep.subr.bf16.mxu1 %v4047_v3 }
 0x96c   : > { %3417 = vmatpush3.bf16.msra.mxu1 %v3708_v4 }
 0x96d   : > { %3422 = vmatprep.subr.bf16.mxu1 %v4047_v3 }
 0x971   : > { %v3742_v15 = vpop.eup %3741 }
 0x972   : > { %v2061_v18 = vmul.f32 %v3742_v15, %v2055_v14 }
 0x973   : > { %v3744_v19 = vpop.eup %3743 }
 0x974   : > { %v2069_v23 = vmul.f32 %v3089_v16, %v2061_v18  ;;  %v2062_v24 = vmul.f32 %v3744_v19, %v2056_v17 }
 0x976   : > { %v4731_v26 = vadd.f32 %v3090_v20, %v2069_v23  ;;  %v2070_v27 = vmul.f32 %v3089_v16, %v2062_v24 }
 0x978   : > { %v4733_v28 = vadd.f32 %v3090_v20, %v2070_v27  ;;  %v2113_v29 = vrot.slane %v4731_v26, 7  ;;  %v2316_v56 = vrot.slane %v4731_v26, 1 }
 0x97a   : > { %v2114_v31 = vrot.slane %v4733_v28, 7  ;;  %v2224_v47 = vpack.c.bf16 %v4733_v28, %v4731_v26  ;;  %v2317_v54 = vrot.slane %v4733_v28, 1 }
 0x97c   : > { %v2116_v34 = vsel %vm2115_vm8, %v2113_v29, %v2114_v31  ;;  %v2117_v35 = vsel %vm2115_vm8, %v2114_v31, %v2113_v29  ;;  %v2319_v57 = vsel %vm2318_vm9, %v2316_v56, %v2317_v54  ;;  %v2320_v58 = vsel %vm2318_vm9, %v2317_v54, %v2316_v56 }
 0x97d   : > { %v2130_v36 = vmul.f32 %v4739_v32, %v2117_v35  ;;  %v2131_v37 = vmul.f32 %v4742_v33, %v2116_v34  ;;  %v2333_v62 = vmul.f32 %v3110_v59, %v2319_v57  ;;  %v2334_v63 = vmul.f32 %v3111_v60, %v2320_v58  ;;  %v3709_v34 = vld [vmem:[%s4492_s1 + $0x40] sm:$0xff]  }
 0x97f   : > { %v2132_v39 = vpack.c.bf16 %v2131_v37, %v2130_v36  ;;  %v2335_v0 = vpack.c.bf16 %v2334_v63, %v2333_v62  ;;  %v3710_v37 = vld [vmem:[%s4492_s1 + $0x48] sm:$0xff]  }
 0x981   : > { %3359 = vmatmul.mubr.bf16.vlgmr.msra.gmra.mrb[20].mxu0 %v2132_v39  ;;  %v3715_v39 = vld [vmem:[%s4492_s1 + $0x70] sm:$0xff]  }
 0x982   : > { %3363 = vmatpush3.bf16.msra.mxu0 %v3685_v38  ;;  %3378 = vmatprep.mubr.msk.bf16.mxu0 %vm4048_vm3, %v4047_v3  ;;  %v3714_v38 = vld [vmem:[%s4492_s1 + $0x68] sm:$0xff]  }
 0x983   : > { %3364 = vmatprep.subr.bf16.mxu0 %v4047_v3 }
 0x986   : > { %3365 = vmatpush3.bf16.msra.mxu0 %v3686_v40  ;;  %v3716_v40 = vld [vmem:[%s4492_s1 + $0x78] sm:$0xff]  }
 0x987   : > { %3366 = vmatprep.subr.bf16.mxu0 %v4047_v3 }
 0x98a   : > { %3367 = vmatpush3.bf16.msra.mxu0 %v3687_v41  ;;  %v3717_v41 = vld [vmem:[%s4492_s1 + $0x80] sm:$0xff]  }
 0x98b   : > { %3368 = vmatprep.subr.bf16.mxu0 %v4047_v3 }
 0x98e   : > { %3369 = vmatpush3.bf16.msra.mxu0 %v3688_v42  ;;  %v3718_v42 = vld [vmem:[%s4492_s1 + $0x88] sm:$0xff]  }
 0x98f   : > { %3370 = vmatprep.subr.bf16.mxu0 %v4047_v3 }
 0x992   : > { %3371 = vmatpush3.bf16.msra.mxu0 %v3689_v25  ;;  %v3719_v25 = vld [vmem:[%s4492_s1 + $0x90] sm:$0xff]  }
 0x993   : > { %3372 = vmatprep.subr.bf16.mxu0 %v4047_v3 }
 0x996   : > { %3373 = vmatpush3.bf16.msra.mxu0 %v3690_v43  ;;  %v3720_v43 = vld [vmem:[%s4492_s1 + $0x98] sm:$0xff]  }
 0x997   : > { %3374 = vmatprep.subr.bf16.mxu0 %v4047_v3 }
 0x99a   : > { %3375 = vmatpush3.bf16.msra.mxu0 %v3691_v44  ;;  %v3721_v44 = vld [vmem:[%s4492_s1 + $0xa0] sm:$0xff]  }
 0x99b   : > { %3376 = vmatprep.subr.bf16.mxu0 %v4047_v3 }
 0x99e   : > { %3377 = vmatpush3.bf16.msra.mxu0 %v3692_v45  ;;  %v3722_v45 = vld [vmem:[%s4492_s1 + $0xa8] sm:$0xff]  }
 0x99f   : > { %3382 = vmatprep.subr.bf16.mxu0 %v4047_v3 }
 0x9a1   : > { %3379 = vmatmul.mubr.bf16.vlgmr.msra.gmra.mrb[20].mxu0 %v2224_v47  ;;  %v3724_v47 = vld [vmem:[%s4492_s1 + $0xb8] sm:$0xff]  }
 0x9a2   : > { %3383 = vmatpush3.bf16.msra.mxu0 %v3693_v46  ;;  %3398 = vmatprep.mubr.msk.bf16.mxu0 %vm4048_vm3, %v4047_v3  ;;  %v3723_v46 = vld [vmem:[%s4492_s1 + $0xb0] sm:$0xff]  }
 0x9a3   : > { %3384 = vmatprep.subr.bf16.mxu0 %v4047_v3 }
 0x9a6   : > { %3385 = vmatpush3.bf16.msra.mxu0 %v3694_v49 }
 0x9a7   : > { %3386 = vmatprep.subr.bf16.mxu0 %v4047_v3 }
 0x9aa   : > { %3387 = vmatpush3.bf16.msra.mxu0 %v3695_v48 }
 0x9ab   : > { %3388 = vmatprep.subr.bf16.mxu0 %v4047_v3 }
 0x9ae   : > { %3389 = vmatpush3.bf16.msra.mxu0 %v3696_v50 }
 0x9af   : > { %3390 = vmatprep.subr.bf16.mxu0 %v4047_v3 }
 0x9b2   : > { %3391 = vmatpush3.bf16.msra.mxu0 %v3697_v30 }
 0x9b3   : > { %3392 = vmatprep.subr.bf16.mxu0 %v4047_v3 }
 0x9b6   : > { %3393 = vmatpush3.bf16.msra.mxu0 %v3698_v53 }
 0x9b7   : > { %3394 = vmatprep.subr.bf16.mxu0 %v4047_v3 }
 0x9ba   : > { %3395 = vmatpush3.bf16.msra.mxu0 %v3699_v55 }
 0x9bb   : > { %3396 = vmatprep.subr.bf16.mxu0 %v4047_v3 }
 0x9be   : > { %3397 = vmatpush3.bf16.msra.mxu0 %v3700_v61 }
 0x9c1   : > { %3399 = vmatmul.mubr.bf16.vlgmr.msra.gmra.mrb[20].mxu0 %v2335_v0 }
 0xa94   : > { %v2418_v7 = vpop.f32.mrb[20].mxu0 }
 0xa95   : > { %v3462_v8 = vadd.f32 %v3091_v6, %v2418_v7  ;;  %v3400_v9 = vpop.f32.mrb[21].mxu0 }
 0xa96   : > { %v2421_v10 = vpop.f32.mrb[22].mxu0 }
 0xa97   : > { %v2427_v11 = vmax.f32 %v3462_v8, 0.0  ;;  %v3463_v12 = vadd.f32 %v3091_v6, %v2421_v10  ;;  %v3401_v13 = vpop.f32.mrb[23].mxu0 }
 0xa99   : > { %v2428_v14 = vmax.f32 %v3463_v12, 0.0  ;;  %v2436_v15 = vrot.slane %v2427_v11, 7  ;;  %v2626_v16 = vrot.slane %v2427_v11, 1 }
 0xa9b   : > { %v2437_v17 = vrot.slane %v2428_v14, 7  ;;  %v2534_v18 = vpack.c.bf16 %v2428_v14, %v2427_v11  ;;  %v2627_v19 = vrot.slane %v2428_v14, 1 }
 0xa9d   : > { %v2438_v20 = vsel %vm2115_vm8, %v2436_v15, %v2437_v17  ;;  %v2439_v21 = vsel %vm2115_vm8, %v2437_v17, %v2436_v15  ;;  %v2628_v22 = vsel %vm2318_vm9, %v2626_v16, %v2627_v19  ;;  %v2629_v23 = vsel %vm2318_vm9, %v2627_v19, %v2626_v16 }
 0xa9e   : > { %v2440_v24 = vmul.f32 %v4739_v32, %v2439_v21  ;;  %v2441_v27 = vmul.f32 %v4742_v33, %v2438_v20  ;;  %v2630_v29 = vmul.f32 %v3110_v59, %v2628_v22  ;;  %v2631_v31 = vmul.f32 %v3111_v60, %v2629_v23  ;;  %v3712_v32 = vld [vmem:[%s4492_s1 + $0x58] sm:$0xff]   ;;  %v3713_v33 = vld [vmem:[%s4492_s1 + $0x60] sm:$0xff]   ;;  %s5020_s1 = sld [smem:[#allocation22_spill]]  ;;  %v3145_v21 = vld [vmem:[%s768_s30] ss:$0 sm:$0xff]  ;;  %s3953_s30 = scalar_lea.vmem %s2777_s15, 256 }
 0xa9f   : > { %p3954_p8 = scmp.ne.s32.totalorder %s2777_s15, %s3953_s30  ;;  %p3961_p12 = scmp.lt.s32.totalorder %s3953_s30, %s3953_s30 }
 0xaa0   : > { %v2442_v35 = vpack.c.bf16 %v2441_v27, %v2440_v24  ;;  %v2632_v36 = vpack.c.bf16 %v2631_v31, %v2630_v29  ;;  %v3146_v27 = vld [vmem:[%s771_s26] ss:$0 sm:$0xff] }
 0xaa1   : > { %p3962_p10 = por %p3961_p12, %p3960_p3 }
 0xaa2   : > { %3419 = vmatmul.mubr.bf16.vlgmr.msra.gmra.mrb[32].mxu1 %v2442_v35 }
 0xaa3   : > { %3423 = vmatpush3.bf16.msra.mxu1 %v3709_v34  ;;  %3438 = vmatprep.mubr.msk.bf16.mxu1 %vm4048_vm3, %v4047_v3 }
 0xaa4   : > { %3424 = vmatprep.subr.bf16.mxu1 %v4047_v3  ;;  %p3535_p11 = scmp.eq.s32.totalorder %s5020_s1, 1 }
 0xaa6   : > { %p3955_p9 = pnand %p3954_p8, %p3535_p11 }
 0xaa7   : > { %3425 = vmatpush3.bf16.msra.mxu1 %v3710_v37 }
 0xaa8   : > { %3426 = vmatprep.subr.bf16.mxu1 %v4047_v3  ;;  %p3956_p13 = pneg %p3955_p9 }
 0xaaa   : > { %p3963_p2 = pnand %p3962_p10, %p3956_p13 }
 0xaab   : > { %3427 = vmatpush3.bf16.msra.mxu1 %v3711_v5 }
 0xaac   : > { %3428 = vmatprep.subr.bf16.mxu1 %v4047_v3 }
 0xaaf   : > { %3429 = vmatpush3.bf16.msra.mxu1 %v3712_v32 }
 0xab0   : > { %3430 = vmatprep.subr.bf16.mxu1 %v4047_v3 }
 0xab3   : > { %3431 = vmatpush3.bf16.msra.mxu1 %v3713_v33 }
 0xab4   : > { %3432 = vmatprep.subr.bf16.mxu1 %v4047_v3 }
 0xab7   : > { %3433 = vmatpush3.bf16.msra.mxu1 %v3714_v38 }
 0xab8   : > { %3434 = vmatprep.subr.bf16.mxu1 %v4047_v3 }
 0xabb   : > { %3435 = vmatpush3.bf16.msra.mxu1 %v3715_v39 }
 0xabc   : > { %3436 = vmatprep.subr.bf16.mxu1 %v4047_v3 }
 0xabf   : > { %3437 = vmatpush3.bf16.msra.mxu1 %v3716_v40 }
 0xac0   : > { %3442 = vmatprep.subr.bf16.mxu1 %v4047_v3 }
 0xac2   : > { %3439 = vmatmul.mubr.bf16.vlgmr.msra.gmra.mrb[36].mxu1 %v2534_v18 }
 0xac3   : > { %3443 = vmatpush3.bf16.msra.mxu1 %v3717_v41  ;;  %3458 = vmatprep.mubr.msk.bf16.mxu1 %vm4048_vm3, %v4047_v3 }
 0xac4   : > { %3444 = vmatprep.subr.bf16.mxu1 %v4047_v3 }
 0xac7   : > { %3445 = vmatpush3.bf16.msra.mxu1 %v3718_v42 }
 0xac8   : > { %3446 = vmatprep.subr.bf16.mxu1 %v4047_v3 }
 0xacb   : > { %3447 = vmatpush3.bf16.msra.mxu1 %v3719_v25 }
 0xacc   : > { %3448 = vmatprep.subr.bf16.mxu1 %v4047_v3 }
 0xacf   : > { %3449 = vmatpush3.bf16.msra.mxu1 %v3720_v43 }
 0xad0   : > { %3450 = vmatprep.subr.bf16.mxu1 %v4047_v3 }
 0xad3   : > { %3451 = vmatpush3.bf16.msra.mxu1 %v3721_v44 }
 0xad4   : > { %3452 = vmatprep.subr.bf16.mxu1 %v4047_v3 }
 0xad7   : > { %3453 = vmatpush3.bf16.msra.mxu1 %v3722_v45 }
 0xad8   : > { %3454 = vmatprep.subr.bf16.mxu1 %v4047_v3 }
 0xadb   : > { %3455 = vmatpush3.bf16.msra.mxu1 %v3723_v46 }
 0xadc   : > { %3456 = vmatprep.subr.bf16.mxu1 %v4047_v3 }
 0xadf   : > { %3457 = vmatpush3.bf16.msra.mxu1 %v3724_v47 }
 0xae2   : > { %3459 = vmatmul.mubr.bf16.vlgmr.msra.gmra.mrb[40].mxu1 %v2632_v36 }
 0xb75   : > { %v2525_v49 = vpop.f32.mrb[32].mxu1 }
 0xb76   : > { %v3420_v48 = vpop.f32.mrb[33].mxu1  ;;  %v2532_v52 = vadd.f32 %v3120_v51, %v2525_v49 }
 0xb77   : > { %v2528_v50 = vpop.f32.mrb[34].mxu1 }
 0xb78   : > { %v3421_v30 = vpop.f32.mrb[35].mxu1  ;;  %v2533_v54 = vadd.f32 %v3120_v51, %v2528_v50 }
 0xb95   : > { %v2617_v53 = vpop.f32.mrb[36].mxu1 }
 0xb96   : > { %v2624_v55 = vadd.f32 %v2617_v53, %v2532_v52  ;;  %v3440_v56 = vpop.f32.mrb[37].mxu1 }
 0xb97   : > { %v2620_v57 = vpop.f32.mrb[38].mxu1 }
 0xb98   : > { %v2625_v58 = vadd.f32 %v2620_v57, %v2533_v54  ;;  %v3441_v59 = vpop.f32.mrb[39].mxu1 }
 0xbb5   : > { %v2715_v3 = vpop.f32.mrb[40].mxu1 }
 0xbb6   : > { %v2722_v60 = vadd.f32 %v2715_v3, %v2624_v55  ;;  %v3460_v61 = vpop.f32.mrb[41].mxu1 }
 0xbb7   : > { %v2718_v62 = vpop.f32.mrb[42].mxu1 }
 0xbb8   : > { %v2724_v63 = vadd.f32 %v2722_v60, %v4731_v26  ;;  %v2723_v0 = vadd.f32 %v2718_v62, %v2625_v58  ;;  %v3461_v1 = vpop.f32.mrb[43].mxu1 }
 0xbba   : > { %v2725_v2 = vadd.f32 %v2723_v0, %v4733_v28  ;;  %2726 = vadd.xlane.f32.xlu0 %v2724_v63  ;;  %v2732_v4 = vmul.f32 %v2724_v63, %v2724_v63 }
 0xbbc   : > { %2728 = vadd.xlane.f32.xlu1 %v2725_v2  ;;  %v2733_v6 = vmul.f32 %v2725_v2, %v2725_v2 }
 0xbbe   : > { %2734 = vadd.xlane.f32.xlu0 %v2732_v4 }
 0xbc0   : > { %2736 = vadd.xlane.f32.xlu1 %v2733_v6 }
 0xc47   : > { %v2727_v7 = vpop.xlane.xlu0 %2726 }
 0xc48   : > { %v2730_v8 = vmul.f32 0.03125, %v2727_v7 }
 0xc49   : > { %v2729_v9 = vpop.xlane.xlu1 %2728 }
 0xc4a   : > { %v2731_v10 = vmul.f32 0.03125, %v2729_v9  ;;  %v2740_v12 = vmul.f32 %v2730_v8, %v2730_v8  ;;  %v2744_v19 = vsub.f32 %v2724_v63, %v2730_v8 }
 0xc4b   : > { %v2735_v11 = vpop.xlane.xlu0 %2734 }
 0xc4c   : > { %v2738_v13 = vmul.f32 0.03125, %v2735_v11  ;;  %v2741_v14 = vmul.f32 %v2731_v10, %v2731_v10  ;;  %v2745_v22 = vsub.f32 %v2725_v2, %v2731_v10 }
 0xc4d   : > { %v2737_v26 = vpop.xlane.xlu1 %2736 }
 0xc4e   : > { %v2742_v15 = vsub.f32 %v2738_v13, %v2740_v12  ;;  %v2739_v16 = vmul.f32 0.03125, %v2737_v26 }
 0xc50   : > { %v2746_v28 = vadd.f32 1e-05, %v2742_v15  ;;  %v2743_v17 = vsub.f32 %v2739_v16, %v2741_v14 }
 0xc52   : > { %3745 = vrsqrt.f32 %v2746_v28  ;;  %v2747_v18 = vadd.f32 1e-05, %v2743_v17 }
 0xc54   : > { %3747 = vrsqrt.f32 %v2747_v18 }
 0xc5c   : > { %v3746_v20 = vpop.eup %3745 }
 0xc5d   : > { %v2750_v23 = vmul.f32 %v3746_v20, %v2744_v19 }
 0xc5e   : > { %v3748_v24 = vpop.eup %3747 }
 0xc5f   : > { %v2751_v29 = vmul.f32 %v3748_v24, %v2745_v22  ;;  %v2758_v31 = vmul.f32 %v3145_v21, %v2750_v23 }
 0xc61   : > { %v2759_v34 = vmul.f32 %v3145_v21, %v2751_v29  ;;  %v2766_v35 = vadd.f32 %v3146_v27, %v2758_v31 }
 0xc63   : > { %v2767_v36 = vadd.f32 %v3146_v27, %v2759_v34  ;;  %2768 = vst [vmem:[#allocation14] sm:$0xff] %v2766_v35 }
 0xc65   : > { %2769 = vst [vmem:[#allocation14 + $0x8] sm:$0xff] %v2767_v36 }
 0xc66   : > { %3966 = shalt.err (!%p3963_p2)
}
 0xc67   : > { %s5023_s18 = sld [smem:[#allocation38_spill]] }
 0xc6d   : > { %s5024_s3 = smov %s5023_s18  ;;  %s3967_s13 = scalar_lea.hbm %s5023_s18, 256 }
 0xc6e   : > { %p3968_p1 = scmp.ne.s32.totalorder %s5024_s3, %s3967_s13  ;;  %p3973_p5 = scmp.lt.u32.totalorder %s3967_s13, %s5024_s3 }
 0xc70   : > { %p3969_p6 = pnand %p3968_p1, %p3535_p11 }
 0xc72   : > { %p3970_p7 = pneg %p3969_p6 }
 0xc74   : > { %p3975_p0 = pnand %p3973_p5, %p3970_p7 }
 0xc76   : > { %3978 = shalt.err (!%p3975_p0)
}
 0xc77   : > { %s4050_s10 = smov 128   ;;  %s4051_s4 = smov 8  }
 0xc78   : > { %3502 = dma.vmem_to_hbm [thread:$0]  (%p3535_p11), %s2777_s15, 256, %s5024_s3, [#allocation4], %s4050_s10, %s4050_s10, %s4051_s4  }
 0xc79   : > { %4012 = dma.done.wait (%p3535_p11), [#allocation4], 256  }
 0xc7a   : > { %4014 = vsyncadd (%p3535_p11), [#allocation4], 4294967040 }
 0xc7b PF: > { %s5025_s21 = sld [smem:[#allocation23_spill]]  ;;  %s5026_s18 = sld [smem:[#allocation20_spill]] }
 0xc7c   : > { %s5027_s19 = sld [smem:[#allocation21_spill]]  ;;  %s5028_s20 = sld [smem:[#allocation24_spill]] }
 0xc81   : > { %p31_p4 = scmp.ge.s32.totalorder %s5025_s21, 4  }
 0xc83   :  { %33 = sbr.rel (!%p31_p4) target bundleno = 22 (0x16), region = 193 }
 0xc8a   :  { %2792 = vsyncpa [#allocation3], 1 }
 0xc8b   :  { %2794 = vsyncpa [#allocation3 + $0x1], 1 }
 0xc8c   :  { %2795 = vsyncpa [#allocation6], 1 }
 0xc8d   :  { %2796 = vsyncpa [#allocation9], 1 }
 0xc8e   :  { %2798 = vsyncpa [#allocation9 + $0x1], 1 }
 0xc8f   :  { %2799 = vsyncpa [#allocation12], 1 }
 0xc90   :  { %2801 = vsyncpa [#allocation12 + $0x1], 1 }
 0xc91   :  { %2802 = vsyncpa [#allocation4], 1 }
 0xc92   :  { %2804 = vsyncpa [#allocation4 + $0x1], 1 }

</bundles_post_ra>
